<compile_context>
chip_gen: v5e
topology: v5e:2x2
jax: 0.10.0
libtpu: 0.0.40
codegen_flags: <defaults>
</compile_context>

<pallas_src>
import numpy as np
import jax
import jax.numpy as jnp
from jax import lax
from jax.experimental import pallas as pl
from jax.experimental.pallas import tpu as pltpu


def _erf(z):
    # Abramowitz & Stegun 7.1.26 rational approximation (|err| <= 1.5e-7),
    # built only from ops with guaranteed Mosaic lowerings (exp / div / where).
    # TODO(synk): swap for lax.erf once erf lowering is confirmed on target jax.
    a1, a2, a3 = 0.254829592, -0.284496736, 1.421413741
    a4, a5, p = -1.453152027, 1.061405429, 0.3275911
    za = jnp.abs(z)
    t = 1.0 / (1.0 + p * za)
    poly = ((((a5 * t + a4) * t + a3) * t + a2) * t + a1) * t
    y = 1.0 - poly * jnp.exp(-(za * za))
    return jnp.where(z < 0.0, -y, y)


def _gelu(x):
    # PyTorch nn.GELU() default (approximate='none'): exact erf formulation.
    return 0.5 * x * (1.0 + _erf(x * 0.7071067811865476))


def tnet_kernel(xw_ref, x_ref, w1_ref, b1_ref, g1_ref, be1_ref,
                w2_ref, b2_ref, w3_ref, b3_ref, g2_ref, be2_ref,
                w4_ref, b4_ref, out_ref):
    L, B, C = x_ref.shape                      # x in (L, B, C) layout
    H = w1_ref.shape[1]
    L1 = (L - 3) // 2 + 1
    L2 = (L1 - 3) // 2 + 1
    eps = 1e-5

    # ---- stem conv1: single dense matmul on the wrapper-built im2col slab ----
    # xw[t*B+b, k*C+c] = x[b, c, 2t+k];  w1[k*C+c, h] = W1[h, c, k]
    y1 = jnp.dot(xw_ref[...], w1_ref[...],
                 preferred_element_type=jnp.float32) + b1_ref[...]       # (L1*B, H)

    # ---- BatchNorm1d(H): train-mode batch stats over all L1*B rows ----
    n1 = float(L1 * B)
    mean1 = jnp.sum(y1, axis=0, keepdims=True) / n1                      # (1, H)
    d1 = y1 - mean1
    var1 = jnp.sum(d1 * d1, axis=0, keepdims=True) / n1                  # biased var
    y1 = _gelu(d1 * lax.rsqrt(var1 + eps) * g1_ref[...] + be1_ref[...])  # (L1*B, H)

    # ---- stem conv2 (H->H, k=3, s=2): 3 tap matmuls, fused with max over time ----
    # w2[k*H+cin, h] = W2[h, cin, k]
    w2 = w2_ref[...]
    z0 = jnp.dot(y1, w2[0:H], preferred_element_type=jnp.float32)        # (L1*B, H)
    z1 = jnp.dot(y1, w2[H:2 * H], preferred_element_type=jnp.float32)
    z2 = jnp.dot(y1, w2[2 * H:3 * H], preferred_element_type=jnp.float32)
    b2 = b2_ref[...]
    feats = None
    for t in range(L2):                         # L2 = 3: tiny unrolled epilogue
        r = 2 * t * B
        o = z0[r:r + B] + z1[r + B:r + 2 * B] + z2[r + 2 * B:r + 3 * B] + b2  # (B, H)
        feats = o if feats is None else jnp.maximum(feats, o)            # max(dim=2)

    # ---- head: Linear -> BatchNorm1d (batch stats) -> GELU ----
    h = jnp.dot(feats, w3_ref[...],
                preferred_element_type=jnp.float32) + b3_ref[...]        # (B, H/2)
    mean2 = jnp.mean(h, axis=0, keepdims=True)
    d2 = h - mean2
    var2 = jnp.mean(d2 * d2, axis=0, keepdims=True)
    h = _gelu(d2 * lax.rsqrt(var2 + eps) * g2_ref[...] + be2_ref[...])

    # ---- T = last Linear (one matmul, pre-permuted weight); out = T @ x ----
    # w4pack[m, j*C+i] = W4[i*C+j, m], b4pack[0, j*C+i] = b4[i*C+j]
    # => tja[b, j*C+i] = T3[b, i, j]
    tja = jnp.dot(h, w4_ref[...],
                  preferred_element_type=jnp.float32) + b4_ref[...]      # (B, C*C)
    x = x_ref[...]                                                       # (L, B, C)
    acc = jnp.zeros((L, B, C), dtype=jnp.float32)
    for j in range(C):
        tj = tja[:, j * C:(j + 1) * C]          # (B, C) = T3[:, :, j]
        acc = acc + x[:, :, j:j + 1] * tj[None, :, :]   # out[l,b,i] += x[l,b,j]*T[b,i,j]
    # TODO(synk): output last dim is C (=4) lanes; lane-dense repack would need an
    # in-kernel relayout that costs more than it saves at these 128-element sizes.
    out_ref[...] = acc.astype(out_ref.dtype)


def tnet_forward(x_bcl, params):
    """x_bcl: (B, C, L) like PyTorch; returns (B, C, L) = (T @ x)."""
    (W1, b1, g1, be1, W2, b2, W3, b3, g2, be2, W4, b4) = params
    B, C, L = x_bcl.shape
    H = W1.shape[0]
    H2 = W3.shape[0]
    L1 = (L - 3) // 2 + 1
    L2 = (L1 - 3) // 2 + 1

    # ---- glue: layout plumbing only (reshape / transpose / slice), wrapper-side ----
    x_lbc = jnp.transpose(x_bcl, (2, 0, 1))                        # (L, B, C)
    # conv1 im2col slab: xw[t*B+b, k*C+c] = x[b, c, 2t+k]
    xw = jnp.stack([x_lbc[2 * t:2 * t + 3] for t in range(L1)], axis=0)   # (L1, 3, B, C)
    xw = jnp.transpose(xw, (0, 2, 1, 3)).reshape(L1 * B, 3 * C)
    w1c = jnp.transpose(W1, (2, 1, 0)).reshape(3 * C, H)           # [k*C+c, h] = W1[h, c, k]
    w2c = jnp.transpose(W2, (2, 1, 0)).reshape(3 * H, H)           # [k*H+c, h] = W2[h, c, k]
    w3t = jnp.transpose(W3)                                        # (H, H2)  (y = x @ W^T)
    w4pack = jnp.transpose(W4.reshape(C, C, H2), (2, 1, 0)).reshape(H2, C * C)
    b4pack = jnp.transpose(b4.reshape(C, C)).reshape(1, C * C)

    args = (xw, x_lbc, w1c, b1.reshape(1, H), g1.reshape(1, H), be1.reshape(1, H),
            w2c, b2.reshape(1, H), w3t, b3.reshape(1, H2),
            g2.reshape(1, H2), be2.reshape(1, H2), w4pack, b4pack)

    # Advisory cost estimate: this kernel is tiny / fixed-overhead bound.
    flops = 2 * (L1 * B * 3 * C * H          # conv1 matmul
                 + 3 * L1 * B * H * H        # conv2 tap matmuls
                 + B * H * H2                # head linear 1
                 + B * H2 * C * C            # head linear 2
                 + L * B * C * C)            # T @ x
    transcendentals = L1 * B * H + B * H2    # one exp per erf evaluation
    bytes_accessed = 4 * (sum(int(np.prod(a.shape)) for a in args) + L * B * C)

    out_lbc = pl.pallas_call(
        tnet_kernel,
        out_shape=jax.ShapeDtypeStruct((L, B, C), jnp.float32),
        in_specs=[pl.BlockSpec(memory_space=pltpu.MemorySpace.VMEM)] * len(args),
        out_specs=pl.BlockSpec(memory_space=pltpu.MemorySpace.VMEM),
        cost_estimate=pl.CostEstimate(flops=flops,
                                      transcendentals=transcendentals,
                                      bytes_accessed=bytes_accessed),
    )(*args)
    return jnp.transpose(out_lbc, (1, 2, 0))                       # back to (B, C, L)


def tnet_reference(x_bcl, params):
    """Pure-JAX reference mirroring the PyTorch forward (train-mode BN)."""
    (W1, b1, g1, be1, W2, b2, W3, b3, g2, be2, W4, b4) = params
    B, C, _ = x_bcl.shape
    eps = 1e-5
    y = lax.conv_general_dilated(x_bcl, W1, window_strides=(2,), padding='VALID',
                                 dimension_numbers=('NCH', 'OIH', 'NCH')) + b1[None, :, None]
    m = jnp.mean(y, axis=(0, 2), keepdims=True)
    v = jnp.mean((y - m) ** 2, axis=(0, 2), keepdims=True)
    y = _gelu((y - m) / jnp.sqrt(v + eps) * g1[None, :, None] + be1[None, :, None])
    y = lax.conv_general_dilated(y, W2, window_strides=(2,), padding='VALID',
                                 dimension_numbers=('NCH', 'OIH', 'NCH')) + b2[None, :, None]
    f = jnp.max(y, axis=2)
    h = f @ W3.T + b3
    m2 = jnp.mean(h, axis=0, keepdims=True)
    v2 = jnp.mean((h - m2) ** 2, axis=0, keepdims=True)
    h = _gelu((h - m2) / jnp.sqrt(v2 + eps) * g2 + be2)
    T = (h @ W4.T + b4).reshape(B, C, C)
    return jnp.einsum('bij,bjl->bil', T, x_bcl)


if __name__ == "__main__":
    B, C, L, H = 2, 4, 16, 32      # batch, in_channels, seq length, hidden_channels
    H2 = H // 2
    key = jax.random.PRNGKey(0)
    ks = jax.random.split(key, 13)
    W1 = 0.30 * jax.random.normal(ks[0], (H, C, 3), jnp.float32)     # Conv1d weight (O, I, K)
    b1 = 0.10 * jax.random.normal(ks[1], (H,), jnp.float32)
    g1 = 1.0 + 0.10 * jax.random.normal(ks[2], (H,), jnp.float32)    # BN1 gamma
    be1 = 0.10 * jax.random.normal(ks[3], (H,), jnp.float32)         # BN1 beta
    W2 = 0.20 * jax.random.normal(ks[4], (H, H, 3), jnp.float32)
    b2 = 0.10 * jax.random.normal(ks[5], (H,), jnp.float32)
    W3 = 0.20 * jax.random.normal(ks[6], (H2, H), jnp.float32)       # Linear weight (out, in)
    b3 = 0.10 * jax.random.normal(ks[7], (H2,), jnp.float32)
    g2 = 1.0 + 0.10 * jax.random.normal(ks[8], (H2,), jnp.float32)
    be2 = 0.10 * jax.random.normal(ks[9], (H2,), jnp.float32)
    W4 = 0.20 * jax.random.normal(ks[10], (C * C, H2), jnp.float32)
    b4 = 0.10 * jax.random.normal(ks[11], (C * C,), jnp.float32)
    params = (W1, b1, g1, be1, W2, b2, W3, b3, g2, be2, W4, b4)

    x = jax.random.normal(ks[12], (B, C, L), jnp.float32)            # PyTorch NCL input

    out = jax.jit(tnet_forward)(x, params)
    out = jax.block_until_ready(out)
    assert out.shape == (B, C, L), out.shape

    ref = tnet_reference(x, params)
    np.testing.assert_allclose(np.asarray(out), np.asarray(ref), rtol=2e-2, atol=2e-2)
    print("KERNEL_OK")
</pallas_src>

<mosaic_0001>
module attributes {stable_mosaic.version = 11 : i64} {
  func.func @tnet_kernel(%arg0: memref<14x12xf32, #tpu.memory_space<vmem>>, %arg1: memref<16x2x4xf32, #tpu.memory_space<vmem>>, %arg2: memref<12x32xf32, #tpu.memory_space<vmem>>, %arg3: memref<1x32xf32, #tpu.memory_space<vmem>>, %arg4: memref<1x32xf32, #tpu.memory_space<vmem>>, %arg5: memref<1x32xf32, #tpu.memory_space<vmem>>, %arg6: memref<96x32xf32, #tpu.memory_space<vmem>>, %arg7: memref<1x32xf32, #tpu.memory_space<vmem>>, %arg8: memref<32x16xf32, #tpu.memory_space<vmem>>, %arg9: memref<1x16xf32, #tpu.memory_space<vmem>>, %arg10: memref<1x16xf32, #tpu.memory_space<vmem>>, %arg11: memref<1x16xf32, #tpu.memory_space<vmem>>, %arg12: memref<16x16xf32, #tpu.memory_space<vmem>>, %arg13: memref<1x16xf32, #tpu.memory_space<vmem>>, %arg14: memref<16x2x4xf32, #tpu.memory_space<vmem>>) attributes {dimension_semantics = [], scalar_prefetch = 0 : i64, scratch_operands = 0 : i64, tpu.core_type = #tpu.core_type<tc>} {
    %c0 = arith.constant 0 : index
    %c0_0 = arith.constant 0 : index
    %0 = vector.load %arg0[%c0, %c0_0] : memref<14x12xf32, #tpu.memory_space<vmem>>, vector<14x12xf32>
    %c0_1 = arith.constant 0 : index
    %c0_2 = arith.constant 0 : index
    %1 = vector.load %arg2[%c0_1, %c0_2] : memref<12x32xf32, #tpu.memory_space<vmem>>, vector<12x32xf32>
    %cst = arith.constant dense<0.000000e+00> : vector<14x32xf32>
    %2 = tpu.matmul %0, %1, %cst {dimension_numbers = #tpu.dot_dimension_numbers<[1], [0], [0], [1], [0, 0, 1, 1], [], []>} : vector<14x12xf32>, vector<12x32xf32>, vector<14x32xf32> -> vector<14x32xf32>
    %c0_3 = arith.constant 0 : index
    %c0_4 = arith.constant 0 : index
    %3 = vector.load %arg3[%c0_3, %c0_4] : memref<1x32xf32, #tpu.memory_space<vmem>>, vector<1x32xf32>
    %4 = vector.broadcast %3 : vector<1x32xf32> to vector<14x32xf32>
    %5 = arith.addf %2, %4 : vector<14x32xf32>
    %cst_5 = arith.constant dense<0.000000e+00> : vector<32xf32>
    %6 = vector.multi_reduction <add>, %5, %cst_5 [0] : vector<14x32xf32> to vector<32xf32>
    %7 = vector.shape_cast %6 : vector<32xf32> to vector<1x32xf32>
    %cst_6 = arith.constant 1.400000e+01 : f32
    %8 = vector.broadcast %cst_6 : f32 to vector<1x32xf32>
    %9 = arith.divf %7, %8 : vector<1x32xf32>
    %10 = vector.broadcast %9 : vector<1x32xf32> to vector<14x32xf32>
    %11 = arith.subf %5, %10 : vector<14x32xf32>
    %12 = arith.mulf %11, %11 : vector<14x32xf32>
    %cst_7 = arith.constant dense<0.000000e+00> : vector<32xf32>
    %13 = vector.multi_reduction <add>, %12, %cst_7 [0] : vector<14x32xf32> to vector<32xf32>
    %14 = vector.shape_cast %13 : vector<32xf32> to vector<1x32xf32>
    %cst_8 = arith.constant 1.400000e+01 : f32
    %15 = vector.broadcast %cst_8 : f32 to vector<1x32xf32>
    %16 = arith.divf %14, %15 : vector<1x32xf32>
    %cst_9 = arith.constant 9.99999974E-6 : f32
    %17 = vector.broadcast %cst_9 : f32 to vector<1x32xf32>
    %18 = arith.addf %16, %17 : vector<1x32xf32>
    %19 = math.rsqrt %18 : vector<1x32xf32>
    %20 = vector.broadcast %19 : vector<1x32xf32> to vector<14x32xf32>
    %21 = arith.mulf %11, %20 : vector<14x32xf32>
    %c0_10 = arith.constant 0 : index
    %c0_11 = arith.constant 0 : index
    %22 = vector.load %arg4[%c0_10, %c0_11] : memref<1x32xf32, #tpu.memory_space<vmem>>, vector<1x32xf32>
    %23 = vector.broadcast %22 : vector<1x32xf32> to vector<14x32xf32>
    %24 = arith.mulf %21, %23 : vector<14x32xf32>
    %c0_12 = arith.constant 0 : index
    %c0_13 = arith.constant 0 : index
    %25 = vector.load %arg5[%c0_12, %c0_13] : memref<1x32xf32, #tpu.memory_space<vmem>>, vector<1x32xf32>
    %26 = vector.broadcast %25 : vector<1x32xf32> to vector<14x32xf32>
    %27 = arith.addf %24, %26 : vector<14x32xf32>
    %cst_14 = arith.constant 5.000000e-01 : f32
    %28 = vector.broadcast %cst_14 : f32 to vector<14x32xf32>
    %29 = arith.mulf %28, %27 : vector<14x32xf32>
    %cst_15 = arith.constant 0.707106769 : f32
    %30 = vector.broadcast %cst_15 : f32 to vector<14x32xf32>
    %31 = arith.mulf %27, %30 : vector<14x32xf32>
    %32 = math.absf %31 : vector<14x32xf32>
    %cst_16 = arith.constant 0.327591091 : f32
    %33 = vector.broadcast %cst_16 : f32 to vector<14x32xf32>
    %34 = arith.mulf %33, %32 : vector<14x32xf32>
    %cst_17 = arith.constant 1.000000e+00 : f32
    %35 = vector.broadcast %cst_17 : f32 to vector<14x32xf32>
    %36 = arith.addf %35, %34 : vector<14x32xf32>
    %cst_18 = arith.constant 1.000000e+00 : f32
    %37 = vector.broadcast %cst_18 : f32 to vector<14x32xf32>
    %38 = arith.divf %37, %36 : vector<14x32xf32>
    %cst_19 = arith.constant 1.06140542 : f32
    %39 = vector.broadcast %cst_19 : f32 to vector<14x32xf32>
    %40 = arith.mulf %39, %38 : vector<14x32xf32>
    %cst_20 = arith.constant -1.45315206 : f32
    %41 = vector.broadcast %cst_20 : f32 to vector<14x32xf32>
    %42 = arith.addf %40, %41 : vector<14x32xf32>
    %43 = arith.mulf %42, %38 : vector<14x32xf32>
    %cst_21 = arith.constant 1.42141378 : f32
    %44 = vector.broadcast %cst_21 : f32 to vector<14x32xf32>
    %45 = arith.addf %43, %44 : vector<14x32xf32>
    %46 = arith.mulf %45, %38 : vector<14x32xf32>
    %cst_22 = arith.constant -0.284496725 : f32
    %47 = vector.broadcast %cst_22 : f32 to vector<14x32xf32>
    %48 = arith.addf %46, %47 : vector<14x32xf32>
    %49 = arith.mulf %48, %38 : vector<14x32xf32>
    %cst_23 = arith.constant 0.254829586 : f32
    %50 = vector.broadcast %cst_23 : f32 to vector<14x32xf32>
    %51 = arith.addf %49, %50 : vector<14x32xf32>
    %52 = arith.mulf %51, %38 : vector<14x32xf32>
    %53 = arith.mulf %32, %32 : vector<14x32xf32>
    %cst_24 = arith.constant 0.000000e+00 : f32
    %54 = vector.broadcast %cst_24 : f32 to vector<14x32xf32>
    %55 = arith.subf %54, %53 : vector<14x32xf32>
    %56 = math.exp %55 : vector<14x32xf32>
    %57 = arith.mulf %52, %56 : vector<14x32xf32>
    %cst_25 = arith.constant 1.000000e+00 : f32
    %58 = vector.broadcast %cst_25 : f32 to vector<14x32xf32>
    %59 = arith.subf %58, %57 : vector<14x32xf32>
    %cst_26 = arith.constant 0.000000e+00 : f32
    %60 = vector.broadcast %cst_26 : f32 to vector<14x32xf32>
    %61 = arith.cmpf olt, %31, %60 : vector<14x32xf32>
    %cst_27 = arith.constant 0.000000e+00 : f32
    %62 = vector.broadcast %cst_27 : f32 to vector<14x32xf32>
    %63 = arith.subf %62, %59 : vector<14x32xf32>
    %64 = arith.select %61, %63, %59 : vector<14x32xi1>, vector<14x32xf32>
    %cst_28 = arith.constant 1.000000e+00 : f32
    %65 = vector.broadcast %cst_28 : f32 to vector<14x32xf32>
    %66 = arith.addf %65, %64 : vector<14x32xf32>
    %67 = arith.mulf %29, %66 : vector<14x32xf32>
    %c0_29 = arith.constant 0 : index
    %c0_30 = arith.constant 0 : index
    %68 = vector.load %arg6[%c0_29, %c0_30] : memref<96x32xf32, #tpu.memory_space<vmem>>, vector<96x32xf32>
    %69 = vector.extract_strided_slice %68 {offsets = [0, 0], sizes = [32, 32], strides = [1, 1]} : vector<96x32xf32> to vector<32x32xf32>
    %cst_31 = arith.constant dense<0.000000e+00> : vector<14x32xf32>
    %70 = tpu.matmul %67, %69, %cst_31 {dimension_numbers = #tpu.dot_dimension_numbers<[1], [0], [0], [1], [0, 0, 1, 1], [], []>} : vector<14x32xf32>, vector<32x32xf32>, vector<14x32xf32> -> vector<14x32xf32>
    %71 = vector.extract_strided_slice %68 {offsets = [32, 0], sizes = [32, 32], strides = [1, 1]} : vector<96x32xf32> to vector<32x32xf32>
    %cst_32 = arith.constant dense<0.000000e+00> : vector<14x32xf32>
    %72 = tpu.matmul %67, %71, %cst_32 {dimension_numbers = #tpu.dot_dimension_numbers<[1], [0], [0], [1], [0, 0, 1, 1], [], []>} : vector<14x32xf32>, vector<32x32xf32>, vector<14x32xf32> -> vector<14x32xf32>
    %73 = vector.extract_strided_slice %68 {offsets = [64, 0], sizes = [32, 32], strides = [1, 1]} : vector<96x32xf32> to vector<32x32xf32>
    %cst_33 = arith.constant dense<0.000000e+00> : vector<14x32xf32>
    %74 = tpu.matmul %67, %73, %cst_33 {dimension_numbers = #tpu.dot_dimension_numbers<[1], [0], [0], [1], [0, 0, 1, 1], [], []>} : vector<14x32xf32>, vector<32x32xf32>, vector<14x32xf32> -> vector<14x32xf32>
    %c0_34 = arith.constant 0 : index
    %c0_35 = arith.constant 0 : index
    %75 = vector.load %arg7[%c0_34, %c0_35] : memref<1x32xf32, #tpu.memory_space<vmem>>, vector<1x32xf32>
    %76 = vector.extract_strided_slice %70 {offsets = [0, 0], sizes = [2, 32], strides = [1, 1]} : vector<14x32xf32> to vector<2x32xf32>
    %77 = vector.extract_strided_slice %72 {offsets = [2, 0], sizes = [2, 32], strides = [1, 1]} : vector<14x32xf32> to vector<2x32xf32>
    %78 = arith.addf %76, %77 : vector<2x32xf32>
    %79 = vector.extract_strided_slice %74 {offsets = [4, 0], sizes = [2, 32], strides = [1, 1]} : vector<14x32xf32> to vector<2x32xf32>
    %80 = arith.addf %78, %79 : vector<2x32xf32>
    %81 = vector.broadcast %75 : vector<1x32xf32> to vector<2x32xf32>
    %82 = arith.addf %80, %81 : vector<2x32xf32>
    %83 = vector.extract_strided_slice %70 {offsets = [4, 0], sizes = [2, 32], strides = [1, 1]} : vector<14x32xf32> to vector<2x32xf32>
    %84 = vector.extract_strided_slice %72 {offsets = [6, 0], sizes = [2, 32], strides = [1, 1]} : vector<14x32xf32> to vector<2x32xf32>
    %85 = arith.addf %83, %84 : vector<2x32xf32>
    %86 = vector.extract_strided_slice %74 {offsets = [8, 0], sizes = [2, 32], strides = [1, 1]} : vector<14x32xf32> to vector<2x32xf32>
    %87 = arith.addf %85, %86 : vector<2x32xf32>
    %88 = vector.broadcast %75 : vector<1x32xf32> to vector<2x32xf32>
    %89 = arith.addf %87, %88 : vector<2x32xf32>
    %90 = arith.maximumf %82, %89 : vector<2x32xf32>
    %91 = vector.extract_strided_slice %70 {offsets = [8, 0], sizes = [2, 32], strides = [1, 1]} : vector<14x32xf32> to vector<2x32xf32>
    %92 = vector.extract_strided_slice %72 {offsets = [10, 0], sizes = [2, 32], strides = [1, 1]} : vector<14x32xf32> to vector<2x32xf32>
    %93 = arith.addf %91, %92 : vector<2x32xf32>
    %94 = vector.extract_strided_slice %74 {offsets = [12, 0], sizes = [2, 32], strides = [1, 1]} : vector<14x32xf32> to vector<2x32xf32>
    %95 = arith.addf %93, %94 : vector<2x32xf32>
    %96 = vector.broadcast %75 : vector<1x32xf32> to vector<2x32xf32>
    %97 = arith.addf %95, %96 : vector<2x32xf32>
    %98 = arith.maximumf %90, %97 : vector<2x32xf32>
    %c0_36 = arith.constant 0 : index
    %c0_37 = arith.constant 0 : index
    %99 = vector.load %arg8[%c0_36, %c0_37] : memref<32x16xf32, #tpu.memory_space<vmem>>, vector<32x16xf32>
    %cst_38 = arith.constant dense<0.000000e+00> : vector<2x16xf32>
    %100 = tpu.matmul %98, %99, %cst_38 {dimension_numbers = #tpu.dot_dimension_numbers<[1], [0], [0], [1], [0, 0, 1, 1], [], []>} : vector<2x32xf32>, vector<32x16xf32>, vector<2x16xf32> -> vector<2x16xf32>
    %c0_39 = arith.constant 0 : index
    %c0_40 = arith.constant 0 : index
    %101 = vector.load %arg9[%c0_39, %c0_40] : memref<1x16xf32, #tpu.memory_space<vmem>>, vector<1x16xf32>
    %102 = vector.broadcast %101 : vector<1x16xf32> to vector<2x16xf32>
    %103 = arith.addf %100, %102 : vector<2x16xf32>
    %cst_41 = arith.constant dense<0.000000e+00> : vector<16xf32>
    %104 = vector.multi_reduction <add>, %103, %cst_41 [0] : vector<2x16xf32> to vector<16xf32>
    %105 = vector.shape_cast %104 : vector<16xf32> to vector<1x16xf32>
    %cst_42 = arith.constant 2.000000e+00 : f32
    %106 = vector.broadcast %cst_42 : f32 to vector<1x16xf32>
    %107 = arith.divf %105, %106 : vector<1x16xf32>
    %108 = vector.broadcast %107 : vector<1x16xf32> to vector<2x16xf32>
    %109 = arith.subf %103, %108 : vector<2x16xf32>
    %110 = arith.mulf %109, %109 : vector<2x16xf32>
    %cst_43 = arith.constant dense<0.000000e+00> : vector<16xf32>
    %111 = vector.multi_reduction <add>, %110, %cst_43 [0] : vector<2x16xf32> to vector<16xf32>
    %112 = vector.shape_cast %111 : vector<16xf32> to vector<1x16xf32>
    %cst_44 = arith.constant 2.000000e+00 : f32
    %113 = vector.broadcast %cst_44 : f32 to vector<1x16xf32>
    %114 = arith.divf %112, %113 : vector<1x16xf32>
    %cst_45 = arith.constant 9.99999974E-6 : f32
    %115 = vector.broadcast %cst_45 : f32 to vector<1x16xf32>
    %116 = arith.addf %114, %115 : vector<1x16xf32>
    %117 = math.rsqrt %116 : vector<1x16xf32>
    %118 = vector.broadcast %117 : vector<1x16xf32> to vector<2x16xf32>
    %119 = arith.mulf %109, %118 : vector<2x16xf32>
    %c0_46 = arith.constant 0 : index
    %c0_47 = arith.constant 0 : index
    %120 = vector.load %arg10[%c0_46, %c0_47] : memref<1x16xf32, #tpu.memory_space<vmem>>, vector<1x16xf32>
    %121 = vector.broadcast %120 : vector<1x16xf32> to vector<2x16xf32>
    %122 = arith.mulf %119, %121 : vector<2x16xf32>
    %c0_48 = arith.constant 0 : index
    %c0_49 = arith.constant 0 : index
    %123 = vector.load %arg11[%c0_48, %c0_49] : memref<1x16xf32, #tpu.memory_space<vmem>>, vector<1x16xf32>
    %124 = vector.broadcast %123 : vector<1x16xf32> to vector<2x16xf32>
    %125 = arith.addf %122, %124 : vector<2x16xf32>
    %cst_50 = arith.constant 5.000000e-01 : f32
    %126 = vector.broadcast %cst_50 : f32 to vector<2x16xf32>
    %127 = arith.mulf %126, %125 : vector<2x16xf32>
    %cst_51 = arith.constant 0.707106769 : f32
    %128 = vector.broadcast %cst_51 : f32 to vector<2x16xf32>
    %129 = arith.mulf %125, %128 : vector<2x16xf32>
    %130 = math.absf %129 : vector<2x16xf32>
    %cst_52 = arith.constant 0.327591091 : f32
    %131 = vector.broadcast %cst_52 : f32 to vector<2x16xf32>
    %132 = arith.mulf %131, %130 : vector<2x16xf32>
    %cst_53 = arith.constant 1.000000e+00 : f32
    %133 = vector.broadcast %cst_53 : f32 to vector<2x16xf32>
    %134 = arith.addf %133, %132 : vector<2x16xf32>
    %cst_54 = arith.constant 1.000000e+00 : f32
    %135 = vector.broadcast %cst_54 : f32 to vector<2x16xf32>
    %136 = arith.divf %135, %134 : vector<2x16xf32>
    %cst_55 = arith.constant 1.06140542 : f32
    %137 = vector.broadcast %cst_55 : f32 to vector<2x16xf32>
    %138 = arith.mulf %137, %136 : vector<2x16xf32>
    %cst_56 = arith.constant -1.45315206 : f32
    %139 = vector.broadcast %cst_56 : f32 to vector<2x16xf32>
    %140 = arith.addf %138, %139 : vector<2x16xf32>
    %141 = arith.mulf %140, %136 : vector<2x16xf32>
    %cst_57 = arith.constant 1.42141378 : f32
    %142 = vector.broadcast %cst_57 : f32 to vector<2x16xf32>
    %143 = arith.addf %141, %142 : vector<2x16xf32>
    %144 = arith.mulf %143, %136 : vector<2x16xf32>
    %cst_58 = arith.constant -0.284496725 : f32
    %145 = vector.broadcast %cst_58 : f32 to vector<2x16xf32>
    %146 = arith.addf %144, %145 : vector<2x16xf32>
    %147 = arith.mulf %146, %136 : vector<2x16xf32>
    %cst_59 = arith.constant 0.254829586 : f32
    %148 = vector.broadcast %cst_59 : f32 to vector<2x16xf32>
    %149 = arith.addf %147, %148 : vector<2x16xf32>
    %150 = arith.mulf %149, %136 : vector<2x16xf32>
    %151 = arith.mulf %130, %130 : vector<2x16xf32>
    %cst_60 = arith.constant 0.000000e+00 : f32
    %152 = vector.broadcast %cst_60 : f32 to vector<2x16xf32>
    %153 = arith.subf %152, %151 : vector<2x16xf32>
    %154 = math.exp %153 : vector<2x16xf32>
    %155 = arith.mulf %150, %154 : vector<2x16xf32>
    %cst_61 = arith.constant 1.000000e+00 : f32
    %156 = vector.broadcast %cst_61 : f32 to vector<2x16xf32>
    %157 = arith.subf %156, %155 : vector<2x16xf32>
    %cst_62 = arith.constant 0.000000e+00 : f32
    %158 = vector.broadcast %cst_62 : f32 to vector<2x16xf32>
    %159 = arith.cmpf olt, %129, %158 : vector<2x16xf32>
    %cst_63 = arith.constant 0.000000e+00 : f32
    %160 = vector.broadcast %cst_63 : f32 to vector<2x16xf32>
    %161 = arith.subf %160, %157 : vector<2x16xf32>
    %162 = arith.select %159, %161, %157 : vector<2x16xi1>, vector<2x16xf32>
    %cst_64 = arith.constant 1.000000e+00 : f32
    %163 = vector.broadcast %cst_64 : f32 to vector<2x16xf32>
    %164 = arith.addf %163, %162 : vector<2x16xf32>
    %165 = arith.mulf %127, %164 : vector<2x16xf32>
    %c0_65 = arith.constant 0 : index
    %c0_66 = arith.constant 0 : index
    %166 = vector.load %arg12[%c0_65, %c0_66] : memref<16x16xf32, #tpu.memory_space<vmem>>, vector<16x16xf32>
    %cst_67 = arith.constant dense<0.000000e+00> : vector<2x16xf32>
    %167 = tpu.matmul %165, %166, %cst_67 {dimension_numbers = #tpu.dot_dimension_numbers<[1], [0], [0], [1], [0, 0, 1, 1], [], []>} : vector<2x16xf32>, vector<16x16xf32>, vector<2x16xf32> -> vector<2x16xf32>
    %c0_68 = arith.constant 0 : index
    %c0_69 = arith.constant 0 : index
    %168 = vector.load %arg13[%c0_68, %c0_69] : memref<1x16xf32, #tpu.memory_space<vmem>>, vector<1x16xf32>
    %169 = vector.broadcast %168 : vector<1x16xf32> to vector<2x16xf32>
    %170 = arith.addf %167, %169 : vector<2x16xf32>
    %c0_70 = arith.constant 0 : index
    %c0_71 = arith.constant 0 : index
    %c0_72 = arith.constant 0 : index
    %171 = vector.load %arg1[%c0_70, %c0_71, %c0_72] : memref<16x2x4xf32, #tpu.memory_space<vmem>>, vector<16x2x4xf32>
    %cst_73 = arith.constant 0.000000e+00 : f32
    %172 = vector.broadcast %cst_73 : f32 to vector<16x2x4xf32>
    %173 = vector.extract_strided_slice %170 {offsets = [0, 0], sizes = [2, 4], strides = [1, 1]} : vector<2x16xf32> to vector<2x4xf32>
    %174 = vector.extract_strided_slice %171 {offsets = [0, 0, 0], sizes = [16, 2, 1], strides = [1, 1, 1]} : vector<16x2x4xf32> to vector<16x2x1xf32>
    %175 = vector.shape_cast %173 : vector<2x4xf32> to vector<1x2x4xf32>
    %176 = vector.broadcast %174 : vector<16x2x1xf32> to vector<16x2x4xf32>
    %177 = vector.broadcast %175 : vector<1x2x4xf32> to vector<16x2x4xf32>
    %178 = arith.mulf %176, %177 : vector<16x2x4xf32>
    %179 = arith.addf %172, %178 : vector<16x2x4xf32>
    %180 = vector.extract_strided_slice %170 {offsets = [0, 4], sizes = [2, 4], strides = [1, 1]} : vector<2x16xf32> to vector<2x4xf32>
    %181 = vector.extract_strided_slice %171 {offsets = [0, 0, 1], sizes = [16, 2, 1], strides = [1, 1, 1]} : vector<16x2x4xf32> to vector<16x2x1xf32>
    %182 = vector.shape_cast %180 : vector<2x4xf32> to vector<1x2x4xf32>
    %183 = vector.broadcast %181 : vector<16x2x1xf32> to vector<16x2x4xf32>
    %184 = vector.broadcast %182 : vector<1x2x4xf32> to vector<16x2x4xf32>
    %185 = arith.mulf %183, %184 : vector<16x2x4xf32>
    %186 = arith.addf %179, %185 : vector<16x2x4xf32>
    %187 = vector.extract_strided_slice %170 {offsets = [0, 8], sizes = [2, 4], strides = [1, 1]} : vector<2x16xf32> to vector<2x4xf32>
    %188 = vector.extract_strided_slice %171 {offsets = [0, 0, 2], sizes = [16, 2, 1], strides = [1, 1, 1]} : vector<16x2x4xf32> to vector<16x2x1xf32>
    %189 = vector.shape_cast %187 : vector<2x4xf32> to vector<1x2x4xf32>
    %190 = vector.broadcast %188 : vector<16x2x1xf32> to vector<16x2x4xf32>
    %191 = vector.broadcast %189 : vector<1x2x4xf32> to vector<16x2x4xf32>
    %192 = arith.mulf %190, %191 : vector<16x2x4xf32>
    %193 = arith.addf %186, %192 : vector<16x2x4xf32>
    %194 = vector.extract_strided_slice %170 {offsets = [0, 12], sizes = [2, 4], strides = [1, 1]} : vector<2x16xf32> to vector<2x4xf32>
    %195 = vector.extract_strided_slice %171 {offsets = [0, 0, 3], sizes = [16, 2, 1], strides = [1, 1, 1]} : vector<16x2x4xf32> to vector<16x2x1xf32>
    %196 = vector.shape_cast %194 : vector<2x4xf32> to vector<1x2x4xf32>
    %197 = vector.broadcast %195 : vector<16x2x1xf32> to vector<16x2x4xf32>
    %198 = vector.broadcast %196 : vector<1x2x4xf32> to vector<16x2x4xf32>
    %199 = arith.mulf %197, %198 : vector<16x2x4xf32>
    %200 = arith.addf %193, %199 : vector<16x2x4xf32>
    %c0_74 = arith.constant 0 : index
    %c0_75 = arith.constant 0 : index
    %c0_76 = arith.constant 0 : index
    %201 = vector.load %arg14[%c0_74, %c0_75, %c0_76] : memref<16x2x4xf32, #tpu.memory_space<vmem>>, vector<16x2x4xf32>
    tpu.vector_store %arg14[%c0_74, %c0_75, %c0_76], %200 {strides = array<i32>} : memref<16x2x4xf32, #tpu.memory_space<vmem>>, vector<16x2x4xf32>,
    return
  }
}

</mosaic_0001>

<bundles_post_ra>
// kernel: tnet_forward.1
= control target key start
LH: loop header
LB: loop body
LE: loop exit
PB: predicated region body
PF: predicated region fallthrough
CT: control target
= control target key end

     0   :  { %vm62_vm0 = vcmask 1043456   ;;  %vm55_vm1 = vcmask 97280   ;;  %v1181_v4 = vmov 14.0   ;;  %vm89_vm2 = vcmask 261120   ;;  %s1189_s29 = smov 116   ;;  %s1829_s2 = inlined_call_operand.vmem [shape: f32[12,32], index: 2, kind: input, shape index: {}]   ;;  %s1830_s0 = inlined_call_operand.vmem [shape: f32[14,12], index: 0, kind: input, shape index: {}]   ;;  %s1831_s3 = inlined_call_operand.vmem [shape: f32[1,32], index: 3, kind: input, shape index: {}]   ;;  %s1832_s4 = inlined_call_operand.vmem [shape: f32[1,32], index: 4, kind: input, shape index: {}]   ;;  %s1833_s5 = inlined_call_operand.vmem [shape: f32[1,32], index: 5, kind: input, shape index: {}]   ;;  %s1834_s6 = inlined_call_operand.vmem [shape: f32[96,32], index: 6, kind: input, shape index: {}]   ;;  %s1835_s7 = inlined_call_operand.vmem [shape: f32[1,32], index: 7, kind: input, shape index: {}]   ;;  %s1836_s9 = inlined_call_operand.vmem [shape: f32[1,16], index: 9, kind: input, shape index: {}]   ;;  %s1837_s10 = inlined_call_operand.vmem [shape: f32[1,16], index: 10, kind: input, shape index: {}]   ;;  %s1838_s11 = inlined_call_operand.vmem [shape: f32[1,16], index: 11, kind: input, shape index: {}]   ;;  %s1839_s8 = inlined_call_operand.vmem [shape: f32[32,16], index: 8, kind: input, shape index: {}]   ;;  %s1840_s1 = inlined_call_operand.vmem [shape: f32[16,2,4], index: 1, kind: input, shape index: {}]   ;;  %s1841_s12 = inlined_call_operand.vmem [shape: f32[16,16], index: 12, kind: input, shape index: {}]   ;;  %s1842_s13 = inlined_call_operand.vmem [shape: f32[1,16], index: 13, kind: input, shape index: {}]   ;;  %s1843_s14 = inlined_call_operand.vmem [shape: f32[16,2,4], index: 14, kind: output, shape index: {}]  }
   0x1   :  { %v50_v0 = vld [vmem:[%s1829_s2 + $0x8] sm:$0xf]  ;;  %v49_v1 = vld [vmem:[%s1829_s2] sm:$0xff]  ;;  %1161 = vrcp.f32 %v1181_v4  ;;  %vm91_vm3 = vcmask 259072   ;;  %v230_v36 = vld [vmem:[%s1834_s6 + $0x18] sm:$0xff] }
   0x2   :  { %1121 = vmatpush.msk.msra.mxu0 %vm62_vm0, %v50_v0  ;;  %v47_v2 = vld [vmem:[%s1830_s0] sm:$0xff]  ;;  %v48_v3 = vld [vmem:[%s1830_s0 + $0x8] sm:$0x3f]  ;;  %v234_v37 = vld [vmem:[%s1834_s6 + $0x38] sm:$0xff]  ;;  %257 = vmatpush.msra.mxu1 %v230_v36 }
   0x3   :  { %v1153_v6 = vld [vmem:[%s1831_s3] ss:$0 sm:$0xff]  ;;  %v238_v38 = vld [vmem:[%s1834_s6 + $0x58] sm:$0xff]  ;;  %280 = vmatpush.msra.mxu2 %v234_v37  ;;  %v229_v39 = vld [vmem:[%s1834_s6 + $0x10] sm:$0xff] }
   0x4   :  { %81 = vmatpush.msra.mxu0 %v49_v1  ;;  %v233_v40 = vld [vmem:[%s1834_s6 + $0x30] sm:$0xff]  ;;  %303 = vmatpush.msra.mxu3 %v238_v38  ;;  %v228_v43 = vld [vmem:[%s1834_s6 + $0x8] sm:$0xff]  ;;  %v227_v47 = vld [vmem:[%s1834_s6] sm:$0xff] }
   0x5   :  { %1122 = vmatmul.msk.f32.vlgmr.msra.gmra.mxu0 %vm55_vm1, %v47_v2  ;;  %v237_v41 = vld [vmem:[%s1834_s6 + $0x50] sm:$0xff]  ;;  %v232_v44 = vld [vmem:[%s1834_s6 + $0x28] sm:$0xff]  ;;  %258 = vmatpush.msra.mxu1 %v229_v39  ;;  %v231_v48 = vld [vmem:[%s1834_s6 + $0x20] sm:$0xff] }
   0x6   :  { %281 = vmatpush.msra.mxu2 %v233_v40  ;;  %v236_v45 = vld [vmem:[%s1834_s6 + $0x48] sm:$0xff]  ;;  %304 = vmatpush.msra.mxu3 %v237_v41  ;;  %v235_v49 = vld [vmem:[%s1834_s6 + $0x40] sm:$0xff] }
   0x7   :  { %v1162_v7 = vpop.eup %1161  ;;  %259 = vmatpush.msra.mxu1 %v228_v43  ;;  %v1154_v59 = vld [vmem:[%s1832_s4] ss:$0 sm:$0xff] }
   0x8   :  { %v101_v9 = vmul.f32 14.0, %v1162_v7  ;;  %vm105_vm4 = vweird.f32 %v1162_v7  ;;  %282 = vmatpush.msra.mxu2 %v232_v44  ;;  %305 = vmatpush.msra.mxu3 %v236_v45  ;;  %v1155_v63 = vld [vmem:[%s1833_s5] ss:$0 sm:$0xff] }
   0x9   :  { %260 = vmatpush.msra.mxu1 %v227_v47 }
   0xa   :  { %v102_v14 = vsub.f32 1.0, %v101_v9  ;;  %283 = vmatpush.msra.mxu2 %v231_v48  ;;  %306 = vmatpush.msra.mxu3 %v235_v49 }
   0xc   :  { %v103_v17 = vmul.f32 %v1162_v7, %v102_v14 }
   0xd   :  { %1123 = vmatmul.msk.f32.gmra.mxu0 %vm55_vm1, %v48_v3 }
   0xe   :  { %v104_v20 = vadd.f32 %v1162_v7, %v103_v17 }
  0x10   :  { %v106_v23 = vsel %vm105_vm4, %v1162_v7, %v104_v20 }
  0x82   :  { %v83_v5 = vpop.f32.mrf.mxu0 }
  0x83   :  { %v84_v8 = vadd.f32 %v1153_v6, %v83_v5 }
  0x85   :  { %v90_v12 = vsel %vm89_vm2, %v84_v8, 0.0 }
  0x8a   :  { %v86_v10 = vpop.f32.mrf.mxu0 }
  0x8b   :  { %v87_v11 = vadd.f32 %v1153_v6, %v86_v10 }
  0x8d   :  { %v92_v13 = vsel %vm91_vm3, %v87_v11, 0.0 }
  0x8e   :  { %v93_v15 = vadd.f32 %v92_v13, %v90_v12 }
  0x90   :  { %v94_v16 = vrot.slane %v93_v15, 4 }
  0x92   :  { %v95_v18 = vadd.f32 %v94_v16, %v93_v15 }
  0x94   :  { %v96_v19 = vrot.slane %v95_v18, 2 }
  0x96   :  { %v97_v21 = vadd.f32 %v96_v19, %v95_v18 }
  0x98   :  { %v98_v22 = vrot.slane %v97_v21, 1 }
  0x9a   :  { %v99_v24 = vadd.f32 %v98_v22, %v97_v21 }
  0x9c   :  { %v107_v25 = vmul.f32 %v106_v23, %v99_v24 }
  0x9e   :  { %v108_v26 = vsub.f32 %v84_v8, %v107_v25  ;;  %v109_v27 = vsub.f32 %v87_v11, %v107_v25 }
  0xa0   :  { %v110_v28 = vmul.f32 %v108_v26, %v108_v26  ;;  %v111_v29 = vmul.f32 %v109_v27, %v109_v27 }
  0xa2   :  { %v112_v30 = vsel %vm89_vm2, %v110_v28, 0.0  ;;  %v113_v31 = vsel %vm91_vm3, %v111_v29, 0.0 }
  0xa3   :  { %v114_v32 = vadd.f32 %v113_v31, %v112_v30 }
  0xa5   :  { %v115_v33 = vrot.slane %v114_v32, 4 }
  0xa7   :  { %v116_v34 = vadd.f32 %v115_v33, %v114_v32 }
  0xa9   :  { %v117_v35 = vrot.slane %v116_v34, 2 }
  0xab   :  { %v118_v42 = vadd.f32 %v117_v35, %v116_v34 }
  0xad   :  { %v119_v46 = vrot.slane %v118_v42, 1 }
  0xaf   :  { %v120_v50 = vadd.f32 %v119_v46, %v118_v42 }
  0xb1   :  { %v121_v51 = vmul.f32 %v120_v50, %v106_v23 }
  0xb3   :  { %v122_v52 = vadd.f32 1e-05, %v121_v51 }
  0xb5   :  { %1163 = vrsqrt.f32 %v122_v52  ;;  %vm129_vm6 = vweird.f32 %v122_v52 }
  0xbb   :  { %v1164_v53 = vpop.eup %1163 }
  0xbc   :  { %v124_v54 = vmul.f32 %v1164_v53, %v122_v52  ;;  %vm130_vm5 = vweird.f32 %v1164_v53 }
  0xbd   :  { %vm131_vm7 = vmor %vm129_vm6, %vm130_vm5 }
  0xbe   :  { %v125_v55 = vmul.f32 %v1164_v53, %v124_v54 }
  0xc0   :  { %v126_v56 = vmul.f32 0.5, %v125_v55 }
  0xc2   :  { %v127_v57 = vsub.f32 1.5, %v126_v56 }
  0xc4   :  { %v128_v58 = vmul.f32 %v1164_v53, %v127_v57 }
  0xc6   :  { %v132_v60 = vsel %vm131_vm7, %v1164_v53, %v128_v58 }
  0xc7   :  { %v133_v61 = vmul.f32 %v132_v60, %v108_v26  ;;  %v134_v62 = vmul.f32 %v132_v60, %v109_v27 }
  0xc9   :  { %v139_v0 = vmul.f32 %v1154_v59, %v133_v61  ;;  %v140_v1 = vmul.f32 %v1154_v59, %v134_v62 }
  0xcb   :  { %v1326_v2 = vadd.f32 %v1155_v63, %v139_v0  ;;  %v1328_v3 = vadd.f32 %v1155_v63, %v140_v1 }
  0xcd   :  { %v1331_v4 = vmul.f32 0.70710677, %v1326_v2  ;;  %v1334_v5 = vmul.f32 0.70710677, %v1328_v3  ;;  %v147_v1 = vmul.f32 0.5, %v1326_v2  ;;  %v346_v2 = vld [vmem:[%s1839_s8 + $0x18] sm:$0xff] }
  0xce   :  { %366 = vmatpush.msrb.mxu0 %v346_v2 }
  0xcf   :  { %v151_v6 = vand.u32 2147483647, %v1331_v4  ;;  %v152_v7 = vand.u32 2147483647, %v1334_v5  ;;  %vm217_vm0 = vcmp.lt.f32.partialorder %v1331_v4, 0.0  ;;  %vm218_vm1 = vcmp.lt.f32.partialorder %v1334_v5, 0.0 }
  0xd0   :  { %v345_v4 = vld [vmem:[%s1839_s8 + $0x10] sm:$0xff]  ;;  %v343_v5 = vld [vmem:[%s1839_s8] sm:$0xff] }
  0xd1   :  { %v153_v8 = vmul.f32 0.3275911, %v151_v6  ;;  %v154_v9 = vmul.f32 0.3275911, %v152_v7  ;;  %v205_v30 = vmul.f32 %v151_v6, %v151_v6  ;;  %v206_v34 = vmul.f32 %v152_v7, %v152_v7  ;;  %367 = vmatpush.msrb.mxu0 %v345_v4 }
  0xd3   :  { %v155_v10 = vadd.f32 1.0, %v153_v8  ;;  %v156_v11 = vadd.f32 1.0, %v154_v9  ;;  %v207_v37 = vsub.f32 0.0, %v205_v30  ;;  %v208_v40 = vsub.f32 0.0, %v206_v34  ;;  %v1156_v34 = vld [vmem:[%s1835_s7] ss:$0 sm:$0xff] }
  0xd5   :  { %1165 = vrcp.f32 %v155_v10  ;;  %v168_v17 = vand.u32 2147483648, %v155_v10  ;;  %v166_v20 = vand.u32 2147483647, %v155_v10  ;;  %v183_v21 = vand.u32 2147483648, %v156_v11 }
  0xd6   :  { %1167 = vrcp.f32 %v156_v11  ;;  %v181_v23 = vand.u32 2147483647, %v156_v11  ;;  %vm162_vm10 = vweird.f32 %v155_v10  ;;  %vm177_vm12 = vweird.f32 %v156_v11 }
  0xd7   :  { %v169_v25 = vor.u32 1.1754944e-38, %v168_v17  ;;  %vm167_vm13 = vcmp.eq.f32.partialorder %v166_v20, 8.507059e+37  ;;  %v184_v28 = vor.u32 1.1754944e-38, %v183_v21  ;;  %v209_v43 = vmul.f32 1.442695, %v207_v37 }
  0xd8   :  { %vm182_vm15 = vcmp.eq.f32.partialorder %v181_v23, 8.507059e+37  ;;  %v211_v46 = vmul.f32 1.442695, %v208_v40  ;;  %v1398_v23 = vld [vmem:[%s1840_s1 + $0x10] sm:$0x3] }
  0xd9   :  { %1169 = vpow2.f32 %v209_v43  ;;  %v1419_v37 = vld [vmem:[%s1840_s1 + $0x16] sm:$0x3] }
  0xda   :  { %1171 = vpow2.f32 %v211_v46  ;;  %v1183_v46 = vmov 1  }
  0xdb   :  { %v1166_v12 = vpop.eup %1165 }
  0xdc   :  { %v1168_v13 = vpop.eup %1167  ;;  %v158_v14 = vmul.f32 %v1166_v12, %v155_v10  ;;  %vm163_vm8 = vweird.f32 %v1166_v12  ;;  %v148_v10 = vmul.f32 0.5, %v1328_v3  ;;  %v344_v3 = vld [vmem:[%s1839_s8 + $0x8] sm:$0xff] }
  0xdd   :  { %v173_v15 = vmul.f32 %v1168_v13, %v156_v11  ;;  %vm178_vm9 = vweird.f32 %v1168_v13  ;;  %vm164_vm11 = vmor %vm162_vm10, %vm163_vm8  ;;  %368 = vmatpush.msrb.mxu0 %v344_v3 }
  0xde   :  { %v159_v16 = vsub.f32 1.0, %v158_v14  ;;  %vm179_vm14 = vmor %vm177_vm12, %vm178_vm9  ;;  %v1368_v14 = vld [vmem:[%s1840_s1 + $0x8] sm:$0x3]  ;;  %vm468_vm12 = vcmask 130048  }
  0xdf   :  { %v174_v18 = vsub.f32 1.0, %v173_v15  ;;  %v1170_v55 = vpop.eup %1169  ;;  %369 = vmatpush.msrb.mxu0 %v343_v5  ;;  %v1375_v15 = vld [vmem:[%s1840_s1 + $0x6] sm:$0x3] }
  0xe0   :  { %v160_v19 = vmul.f32 %v1166_v12, %v159_v16  ;;  %v1172_v57 = vpop.eup %1171  ;;  %v1380_v16 = vld [vmem:[%s1840_s1 + $0xa] sm:$0x3] }
  0xe1   :  { %v175_v22 = vmul.f32 %v1168_v13, %v174_v18 }
  0xe2   :  { %v161_v24 = vadd.f32 %v1166_v12, %v160_v19  ;;  %v1387_v19 = vld [vmem:[%s1840_s1] sm:$0x3] }
  0xe3   :  { %v176_v26 = vadd.f32 %v1168_v13, %v175_v22  ;;  %v1393_v22 = vld [vmem:[%s1840_s1 + $0xe] sm:$0x3] }
  0xe4   :  { %v165_v27 = vsel %vm164_vm11, %v1166_v12, %v161_v24  ;;  %v1363_v12 = vld [vmem:[%s1840_s1 + $0x4] sm:$0x3]  ;;  %v1403_v24 = vld [vmem:[%s1840_s1 + $0x2] sm:$0x3] }
  0xe5   :  { %v170_v29 = vsel %vm167_vm13, %v169_v25, %v165_v27  ;;  %v180_v31 = vsel %vm179_vm14, %v1168_v13, %v176_v26  ;;  %v1182_v13 = vmov 0   ;;  %vm1100_vm13 = vcmask 25600  }
  0xe6   :  { %v187_v32 = vmul.f32 1.0614054, %v170_v29  ;;  %v185_v33 = vsel %vm182_vm15, %v184_v28, %v180_v31  ;;  %1142 = vset.pattern.permute.xlu1 %v1182_v13  ;;  %1143 = vset.pattern.permute.xlu2 %v1182_v13 }
  0xe7   :  { %v188_v35 = vmul.f32 1.0614054, %v185_v33  ;;  %520 = vperm.xlu1 %1142, %v1363_v12   ;;  %530 = vperm.xlu2 %1143, %v1368_v14  }
  0xe8   :  { %v189_v36 = vadd.f32 -1.4531521, %v187_v32  ;;  %1141 = vset.pattern.permute.xlu0 %v1182_v13 }
  0xe9   :  { %v190_v38 = vadd.f32 -1.4531521, %v188_v35  ;;  %510 = vperm.xlu0 %1141, %v1387_v19  }
  0xea   :  { %v191_v39 = vmul.f32 %v189_v36, %v170_v29  ;;  %v1414_v36 = vld [vmem:[%s1840_s1 + $0x14] sm:$0x3] }
  0xeb   :  { %v192_v41 = vmul.f32 %v190_v38, %v185_v33 }
  0xec   :  { %v193_v42 = vadd.f32 1.4214138, %v191_v39 }
  0xed   :  { %v194_v44 = vadd.f32 1.4214138, %v192_v41 }
  0xee   :  { %v195_v45 = vmul.f32 %v193_v42, %v170_v29 }
  0xef   :  { %v196_v47 = vmul.f32 %v194_v44, %v185_v33  ;;  %525 = vperm.xlu1 %1142, %v1375_v15   ;;  %535 = vperm.xlu2 %1143, %v1380_v16  }
  0xf0   :  { %v197_v48 = vadd.f32 -0.28449672, %v195_v45  ;;  %v1426_v45 = vld [vmem:[%s1840_s1 + $0x1a] sm:$0x3] }
  0xf1   :  { %v198_v49 = vadd.f32 -0.28449672, %v196_v47  ;;  %515 = vperm.xlu0 %1141, %v1403_v24   ;;  %v1438_v47 = vld [vmem:[%s1840_s1 + $0x1c] sm:$0x3] }
  0xf2   :  { %v199_v50 = vmul.f32 %v197_v48, %v170_v29  ;;  %v1443_v48 = vld [vmem:[%s1840_s1 + $0xc] sm:$0x3] }
  0xf3   :  { %v200_v51 = vmul.f32 %v198_v49, %v185_v33  ;;  %v1451_v49 = vld [vmem:[%s1840_s1 + $0x12] sm:$0x3] }
  0xf4   :  { %v201_v52 = vadd.f32 0.2548296, %v199_v50  ;;  %v1184_v50 = vmov 2.0  }
  0xf5   :  { %v202_v53 = vadd.f32 0.2548296, %v200_v51  ;;  %1173 = vrcp.f32 %v1184_v50  ;;  %v1458_v51 = vld [vmem:[%s1840_s1 + $0x18] sm:$0x3] }
  0xf6   :  { %v203_v54 = vmul.f32 %v201_v52, %v170_v29 }
  0xf7   :  { %v204_v56 = vmul.f32 %v202_v53, %v185_v33  ;;  %545 = vperm.xlu1 %1142, %v1393_v22   ;;  %550 = vperm.xlu2 %1143, %v1398_v23   ;;  %v1157_v53 = vld [vmem:[%s1836_s9] ss:$0 sm:$0xff] }
  0xf8   :  { %v213_v58 = vmul.f32 %v1170_v55, %v203_v54  ;;  %v1468_v55 = vld [vmem:[%s1840_s1 + $0x1e] sm:$0x3] }
  0xf9   :  { %v214_v59 = vmul.f32 %v1172_v57, %v204_v56  ;;  %540 = vperm.xlu0 %1141, %v1443_v48  }
  0xfa   :  { %v215_v60 = vsub.f32 1.0, %v213_v58 }
  0xfb   :  { %v216_v61 = vsub.f32 1.0, %v214_v59  ;;  %v1174_v52 = vpop.eup %1173 }
  0xfc   :  { %v219_v62 = vsub.f32 0.0, %v215_v60  ;;  %v383_v54 = vmul.f32 2.0, %v1174_v52  ;;  %vm387_vm3 = vweird.f32 %v1174_v52 }
  0xfd   :  { %v220_v0 = vsub.f32 0.0, %v216_v61 }
  0xfe   :  { %v221_v63 = vsel %vm217_vm0, %v219_v62, %v215_v60  ;;  %v384_v58 = vsub.f32 1.0, %v383_v54 }
  0xff   :  { %v223_v6 = vadd.f32 1.0, %v221_v63  ;;  %v222_v8 = vsel %vm218_vm1, %v220_v0, %v216_v61  ;;  %560 = vperm.xlu1 %1142, %v1414_v36   ;;  %565 = vperm.xlu2 %1143, %v1419_v37  }
 0x100   :  { %v224_v9 = vadd.f32 1.0, %v222_v8  ;;  %v385_v61 = vmul.f32 %v1174_v52, %v384_v58 }
 0x101   :  { %v225_v7 = vmul.f32 %v223_v6, %v147_v1  ;;  %555 = vperm.xlu0 %1141, %v1451_v49   ;;  %v1185_v1 = vmov 2  }
 0x102   :  { %v226_v11 = vmul.f32 %v224_v9, %v148_v10  ;;  %v386_v0 = vadd.f32 %v1174_v52, %v385_v61 }
 0x103   :  { %1124 = vmatmul.msk.f32.vlgmr.msra.gmra.mxu1 %vm89_vm2, %v225_v7  ;;  %1126 = vmatmul.msk.f32.vlgmr.msra.gmra.mxu2 %vm89_vm2, %v225_v7 }
 0x104   :  { %1128 = vmatmul.msk.f32.vlgmr.msra.gmra.mxu3 %vm89_vm2, %v225_v7  ;;  %v388_v8 = vsel %vm387_vm3, %v1174_v52, %v386_v0 }
 0x107   :  { %575 = vperm.xlu1 %1142, %v1426_v45   ;;  %580 = vperm.xlu2 %1143, %v1438_v47  }
 0x109   :  { %570 = vperm.xlu0 %1141, %v1458_v51  }
 0x10b   :  { %1125 = vmatmul.msk.f32.gmra.mxu1 %vm89_vm2, %v226_v11  ;;  %1127 = vmatmul.msk.f32.gmra.mxu2 %vm89_vm2, %v226_v11 }
 0x10c   :  { %1129 = vmatmul.msk.f32.gmra.mxu3 %vm89_vm2, %v226_v11 }
 0x10f   :  { %1144 = vset.pattern.permute.xlu1 %v1183_v46  ;;  %1145 = vset.pattern.permute.xlu2 %v1183_v46 }
 0x110   :  { %621 = vperm.xlu1 %1144, %v1387_v19   ;;  %625 = vperm.xlu2 %1145, %v1403_v24  }
 0x111   :  { %585 = vperm.xlu0 %1141, %v1468_v55  }
 0x118   :  { %633 = vperm.xlu1 %1144, %v1375_v15   ;;  %637 = vperm.xlu2 %1145, %v1368_v14  }
 0x119   :  { %1146 = vset.pattern.permute.xlu0 %v1183_v46 }
 0x11a   :  { %629 = vperm.xlu0 %1146, %v1363_v12  }
 0x120   :  { %641 = vperm.xlu1 %1144, %v1380_v16   ;;  %645 = vperm.xlu2 %1145, %v1443_v48  }
 0x122   :  { %649 = vperm.xlu0 %1146, %v1393_v22  }
 0x128   :  { %653 = vperm.xlu1 %1144, %v1398_v23   ;;  %657 = vperm.xlu2 %1145, %v1451_v49  }
 0x12a   :  { %661 = vperm.xlu0 %1146, %v1414_v36  }
 0x130   :  { %665 = vperm.xlu1 %1144, %v1419_v37   ;;  %669 = vperm.xlu2 %1145, %v1458_v51  }
 0x132   :  { %673 = vperm.xlu0 %1146, %v1426_v45  }
 0x138   :  { %677 = vperm.xlu1 %1144, %v1438_v47   ;;  %681 = vperm.xlu2 %1145, %v1468_v55  }
 0x13a   :  { %1149 = vset.pattern.permute.xlu0 %v1185_v1 }
 0x13b   :  { %789 = vperm.xlu0 %1149, %v1363_v12  }
 0x140   :  { %1147 = vset.pattern.permute.xlu1 %v1185_v1  ;;  %1148 = vset.pattern.permute.xlu2 %v1185_v1 }
 0x141   :  { %781 = vperm.xlu1 %1147, %v1387_v19   ;;  %785 = vperm.xlu2 %1148, %v1403_v24  }
 0x143   :  { %809 = vperm.xlu0 %1149, %v1393_v22  }
 0x149   :  { %793 = vperm.xlu1 %1147, %v1375_v15   ;;  %797 = vperm.xlu2 %1148, %v1368_v14  }
 0x14b   :  { %821 = vperm.xlu0 %1149, %v1414_v36  }
 0x151   :  { %801 = vperm.xlu1 %1147, %v1380_v16   ;;  %805 = vperm.xlu2 %1148, %v1443_v48  }
 0x153   :  { %833 = vperm.xlu0 %1149, %v1426_v45  }
 0x159   :  { %813 = vperm.xlu1 %1147, %v1398_v23   ;;  %817 = vperm.xlu2 %1148, %v1451_v49  }
 0x161   :  { %825 = vperm.xlu1 %1147, %v1419_v37   ;;  %829 = vperm.xlu2 %1148, %v1458_v51  }
 0x169   :  { %837 = vperm.xlu1 %1147, %v1438_v47   ;;  %841 = vperm.xlu2 %1148, %v1468_v55  }
 0x180   :  { %v262_v17 = vpop.f32.mrf.mxu1 }
 0x186   :  { %v285_v18 = vpop.f32.mrf.mxu2 }
 0x187   :  { %v308_v20 = vpop.f32.mrf.mxu3  ;;  %v316_v21 = vrot.slane %v285_v18, 2 }
 0x188   :  { %v320_v29 = vrot.slane %v308_v20, 4  ;;  %v265_v30 = vpop.f32.mrf.mxu1 }
 0x189   :  { %v318_v25 = vadd.f32 %v316_v21, %v262_v17 }
 0x18b   :  { %v322_v33 = vadd.f32 %v320_v29, %v318_v25 }
 0x18d   :  { %v326_v40 = vadd.f32 %v1156_v34, %v322_v33 }
 0x18e   :  { %v288_v26 = vpop.f32.mrf.mxu2 }
 0x18f   :  { %v337_v27 = vrot.slane %v288_v26, 2  ;;  %v311_v28 = vpop.f32.mrf.mxu3 }
 0x190   :  { %v328_v31 = vrot.slane %v311_v28, 4 }
 0x191   :  { %v339_v32 = vadd.f32 %v337_v27, %v265_v30  ;;  %v463_v30 = vld [vmem:[%s1841_s12 + $0x8] sm:$0xff] }
 0x192   :  { %v330_v35 = vadd.f32 %v328_v31, %v318_v25  ;;  %486 = vmatpush.msrb.mxu1 %v463_v30 }
 0x193   :  { %v340_v39 = vadd.f32 %v339_v32, %v328_v31  ;;  %v462_v31 = vld [vmem:[%s1841_s12] sm:$0xff]  ;;  %s1187_s12 = smov 124  }
 0x194   :  { %v331_v38 = vadd.f32 %v1156_v34, %v330_v35  ;;  %487 = vmatpush.msrb.mxu1 %v462_v31 }
 0x195   :  { %v341_v43 = vadd.f32 %v1156_v34, %v340_v39  ;;  %v1158_v34 = vld [vmem:[%s1837_s10] ss:$0 sm:$0xff] }
 0x196   :  { %v333_v41 = vrot.slane %v331_v38, 4  ;;  %v1159_v39 = vld [vmem:[%s1838_s11] ss:$0 sm:$0xff] }
 0x198   :  { %v335_v42 = vmax.f32 %v326_v40, %v333_v41  ;;  %v1186_v41 = vmov 3  }
 0x199   :  { %1150 = vset.pattern.permute.xlu1 %v1186_v41  ;;  %1152 = vset.pattern.permute.xlu0 %v1186_v41 }
 0x19a   :  { %v342_v44 = vmax.f32 %v335_v42, %v341_v43  ;;  %941 = vperm.xlu1 %1150, %v1387_v19   ;;  %949 = vperm.xlu0 %1152, %v1363_v12  }
 0x19b   :  { %1151 = vset.pattern.permute.xlu2 %v1186_v41 }
 0x19c   :  { %1130 = vmatmul.msk.f32.vlgmr.msrb.gmra.mxu0 %vm89_vm2, %v342_v44  ;;  %vm374_vm2 = vcmask 123904   ;;  %945 = vperm.xlu2 %1151, %v1403_v24  }
 0x1a2   :  { %953 = vperm.xlu1 %1150, %v1375_v15   ;;  %969 = vperm.xlu0 %1152, %v1393_v22  }
 0x1a4   :  { %957 = vperm.xlu2 %1151, %v1368_v14  }
 0x1aa   :  { %961 = vperm.xlu1 %1150, %v1380_v16   ;;  %981 = vperm.xlu0 %1152, %v1414_v36  }
 0x1ac   :  { %965 = vperm.xlu2 %1151, %v1443_v48  }
 0x1b2   :  { %973 = vperm.xlu1 %1150, %v1398_v23   ;;  %993 = vperm.xlu0 %1152, %v1426_v45  }
 0x1b4   :  { %977 = vperm.xlu2 %1151, %v1451_v49   ;;  %v1531_v49 = vpop.permute.xlu1 %520 }
 0x1ba   :  { %985 = vperm.xlu1 %1150, %v1419_v37  }
 0x1bc   :  { %989 = vperm.xlu2 %1151, %v1458_v51  }
 0x1c2   :  { %997 = vperm.xlu1 %1150, %v1438_v47  }
 0x1c4   :  { %1001 = vperm.xlu2 %1151, %v1468_v55  }
 0x219   :  { %v371_v56 = vpop.f32.mrf.mxu0 }
 0x21a   :  { %v372_v57 = vadd.f32 %v1157_v53, %v371_v56 }
 0x21c   :  { %v375_v59 = vsel %vm374_vm2, %v372_v57, 0.0 }
 0x21d   :  { %v376_v60 = vrot.slane %v375_v59, 4 }
 0x21f   :  { %v377_v62 = vadd.f32 %v376_v60, %v375_v59 }
 0x221   :  { %v378_v63 = vrot.slane %v377_v62, 2 }
 0x223   :  { %v379_v6 = vadd.f32 %v378_v63, %v377_v62 }
 0x225   :  { %v380_v7 = vrot.slane %v379_v6, 1 }
 0x227   :  { %v381_v9 = vadd.f32 %v380_v7, %v379_v6 }
 0x229   :  { %v389_v10 = vmul.f32 %v388_v8, %v381_v9 }
 0x22b   :  { %v390_v11 = vsub.f32 %v372_v57, %v389_v10  ;;  %v1523_v10 = vpop.permute.xlu2 %530 }
 0x22d   :  { %v391_v2 = vmul.f32 %v390_v11, %v390_v11 }
 0x22f   :  { %v392_v4 = vsel %vm374_vm2, %v391_v2, 0.0 }
 0x230   :  { %v393_v3 = vrot.slane %v392_v4, 4 }
 0x232   :  { %v394_v5 = vadd.f32 %v393_v3, %v392_v4  ;;  %v1535_v3 = vpop.permute.xlu1 %525 }
 0x233   :  { %v1526_v45 = vpop.permute.xlu2 %535 }
 0x234   :  { %v395_v13 = vrot.slane %v394_v5, 2 }
 0x236   :  { %v396_v17 = vadd.f32 %v395_v13, %v394_v5 }
 0x238   :  { %v397_v18 = vrot.slane %v396_v17, 1 }
 0x23a   :  { %v398_v20 = vadd.f32 %v397_v18, %v396_v17  ;;  %v1539_v13 = vpop.permute.xlu1 %545 }
 0x23b   :  { %v1529_v47 = vpop.permute.xlu2 %550 }
 0x23c   :  { %v399_v21 = vmul.f32 %v398_v20, %v388_v8 }
 0x23e   :  { %v400_v25 = vadd.f32 1e-05, %v399_v21 }
 0x240   :  { %1175 = vrsqrt.f32 %v400_v25  ;;  %vm407_vm5 = vweird.f32 %v400_v25 }
 0x242   :  { %v1541_v18 = vpop.permute.xlu1 %560 }
 0x243   :  { %v1533_v4 = vpop.permute.xlu2 %565 }
 0x246   :  { %v1176_v26 = vpop.eup %1175 }
 0x247   :  { %v402_v27 = vmul.f32 %v1176_v26, %v400_v25  ;;  %vm408_vm4 = vweird.f32 %v1176_v26  ;;  %v1545_v25 = vpop.permute.xlu0 %510 }
 0x248   :  { %vm409_vm6 = vmor %vm407_vm5, %vm408_vm4 }
 0x249   :  { %v403_v28 = vmul.f32 %v1176_v26, %v402_v27 }
 0x24a   :  { %v1543_v20 = vpop.permute.xlu1 %575 }
 0x24b   :  { %v404_v29 = vmul.f32 0.5, %v403_v28  ;;  %v1537_v5 = vpop.permute.xlu2 %580 }
 0x24d   :  { %v405_v32 = vsub.f32 1.5, %v404_v29 }
 0x24f   :  { %v406_v33 = vmul.f32 %v1176_v26, %v405_v32  ;;  %v1547_v28 = vpop.permute.xlu0 %515 }
 0x251   :  { %v410_v35 = vsel %vm409_vm6, %v1176_v26, %v406_v33 }
 0x252   :  { %v411_v38 = vmul.f32 %v410_v35, %v390_v11  ;;  %v622_v55 = vpop.permute.xlu1 %621 }
 0x253   :  { %v626_v17 = vpop.permute.xlu2 %625 }
 0x254   :  { %v416_v40 = vmul.f32 %v1158_v34, %v411_v38 }
 0x256   :  { %v421_v42 = vadd.f32 %v1159_v39, %v416_v40 }
 0x257   :  { %v1549_v31 = vpop.permute.xlu0 %540 }
 0x258   :  { %v423_v43 = vmul.f32 0.70710677, %v421_v42  ;;  %v422_v11 = vmul.f32 0.5, %v421_v42 }
 0x25a   :  { %v424_v44 = vand.u32 2147483647, %v423_v43  ;;  %vm457_vm11 = vcmp.lt.f32.partialorder %v423_v43, 0.0  ;;  %v634_v27 = vpop.permute.xlu1 %633  ;;  %v1160_v43 = vld [vmem:[%s1842_s13] ss:$0 sm:$0xff]  ;;  %s1188_s13 = smov 120  }
 0x25b   :  { %v638_v51 = vpop.permute.xlu2 %637 }
 0x25c   :  { %v425_v46 = vmul.f32 0.3275911, %v424_v44  ;;  %v451_v12 = vmul.f32 %v424_v44, %v424_v44 }
 0x25e   :  { %v426_v50 = vadd.f32 1.0, %v425_v46  ;;  %v452_v62 = vsub.f32 0.0, %v451_v12 }
 0x25f   :  { %v1551_v34 = vpop.permute.xlu0 %555 }
 0x260   :  { %1177 = vrcp.f32 %v426_v50  ;;  %v438_v54 = vand.u32 2147483648, %v426_v50  ;;  %v436_v57 = vand.u32 2147483647, %v426_v50  ;;  %vm432_vm8 = vweird.f32 %v426_v50 }
 0x261   :  { %v453_v24 = vmul.f32 1.442695, %v452_v62 }
 0x262   :  { %v439_v16 = vor.u32 1.1754944e-38, %v438_v54  ;;  %vm437_vm10 = vcmp.eq.f32.partialorder %v436_v57, 8.507059e+37  ;;  %v642_v30 = vpop.permute.xlu1 %641 }
 0x263   :  { %1179 = vpow2.f32 %v453_v24  ;;  %v646_v21 = vpop.permute.xlu2 %645 }
 0x266   :  { %v1178_v19 = vpop.eup %1177 }
 0x267   :  { %v428_v52 = vmul.f32 %v1178_v19, %v426_v50  ;;  %vm433_vm7 = vweird.f32 %v1178_v19  ;;  %v1553_v39 = vpop.permute.xlu0 %570 }
 0x268   :  { %vm434_vm9 = vmor %vm432_vm8, %vm433_vm7 }
 0x269   :  { %v429_v53 = vsub.f32 1.0, %v428_v52  ;;  %v1180_v14 = vpop.eup %1179 }
 0x26a   :  { %v654_v33 = vpop.permute.xlu1 %653 }
 0x26b   :  { %v430_v56 = vmul.f32 %v1178_v19, %v429_v53  ;;  %v658_v26 = vpop.permute.xlu2 %657 }
 0x26d   :  { %v431_v15 = vadd.f32 %v1178_v19, %v430_v56 }
 0x26f   :  { %v435_v58 = vsel %vm434_vm9, %v1178_v19, %v431_v15  ;;  %v1557_v42 = vpop.permute.xlu0 %585 }
 0x270   :  { %v440_v59 = vsel %vm437_vm10, %v439_v16, %v435_v58 }
 0x271   :  { %v442_v60 = vmul.f32 1.0614054, %v440_v59 }
 0x272   :  { %v666_v38 = vpop.permute.xlu1 %665 }
 0x273   :  { %v443_v61 = vadd.f32 -1.4531521, %v442_v60  ;;  %v670_v29 = vpop.permute.xlu2 %669 }
 0x275   :  { %v444_v63 = vmul.f32 %v443_v61, %v440_v59 }
 0x277   :  { %v445_v23 = vadd.f32 1.4214138, %v444_v63  ;;  %v630_v52 = vpop.permute.xlu0 %629 }
 0x279   :  { %v446_v22 = vmul.f32 %v445_v23, %v440_v59 }
 0x27a   :  { %v678_v41 = vpop.permute.xlu1 %677 }
 0x27b   :  { %v447_v0 = vadd.f32 -0.28449672, %v446_v22  ;;  %v682_v32 = vpop.permute.xlu2 %681 }
 0x27d   :  { %v448_v1 = vmul.f32 %v447_v0, %v440_v59 }
 0x27f   :  { %v449_v6 = vadd.f32 0.2548296, %v448_v1  ;;  %v650_v58 = vpop.permute.xlu0 %649 }
 0x281   :  { %v450_v7 = vmul.f32 %v449_v6, %v440_v59 }
 0x282   :  { %v782_v19 = vpop.permute.xlu1 %781 }
 0x283   :  { %v455_v8 = vmul.f32 %v1180_v14, %v450_v7  ;;  %v786_v35 = vpop.permute.xlu2 %785 }
 0x285   :  { %v456_v37 = vsub.f32 1.0, %v455_v8 }
 0x287   :  { %v458_v36 = vsub.f32 0.0, %v456_v37  ;;  %v662_v24 = vpop.permute.xlu0 %661 }
 0x289   :  { %v459_v9 = vsel %vm457_vm11, %v458_v36, %v456_v37 }
 0x28a   :  { %v460_v2 = vadd.f32 1.0, %v459_v9  ;;  %v794_v16 = vpop.permute.xlu1 %793 }
 0x28b   :  { %v1555_v40 = vpop.permute.xlu2 %797 }
 0x28c   :  { %v461_v48 = vmul.f32 %v460_v2, %v422_v11 }
 0x28e   :  { %1131 = vmatmul.msk.f32.vlgmr.msrb.gmra.mxu1 %vm468_vm12, %v461_v48 }
 0x28f   :  { %v674_v14 = vpop.permute.xlu0 %673 }
 0x292   :  { %v802_v23 = vpop.permute.xlu1 %801 }
 0x293   :  { %v1562_v46 = vpop.permute.xlu2 %805 }
 0x297   :  { %v790_v2 = vpop.permute.xlu0 %789 }
 0x29a   :  { %v814_v7 = vpop.permute.xlu1 %813 }
 0x29b   :  { %v1571_v57 = vpop.permute.xlu2 %817 }
 0x2a2   :  { %v826_v11 = vpop.permute.xlu1 %825 }
 0x2a3   :  { %v1580_v60 = vpop.permute.xlu2 %829 }
 0x2ab   :  { %v1588_v22 = vpop.permute.xlu2 %841 }
 0x2b3   :  { %v946_v36 = vpop.permute.xlu2 %945 }
 0x30b   :  { %v489_v44 = vpop.f32.mrf.mxu1 }
 0x30c   :  { %v1564_v50 = vadd.f32 %v1160_v43, %v489_v44 }
 0x30e   :  { %v684_v53 = vmul.f32 %v622_v55, %v1564_v50  ;;  %v685_v54 = vmul.f32 %v626_v17, %v1564_v50  ;;  %v686_v56 = vmul.f32 %v630_v52, %v1564_v50  ;;  %v689_v15 = vmul.f32 %v642_v30, %v1564_v50 }
 0x30f   :  { %v688_v12 = vmul.f32 %v638_v51, %v1564_v50  ;;  %v687_v59 = vmul.f32 %v634_v27, %v1564_v50  ;;  %v692_v61 = vmul.f32 %v654_v33, %v1564_v50  ;;  %v691_v62 = vmul.f32 %v650_v58, %v1564_v50  ;;  %v810_v27 = vpop.permute.xlu0 %809 }
 0x310   :  { %720 = vrot.lane.b32.xlu2 %v686_v56, %s1187_s12  ;;  %718 = vrot.lane.b32.xlu1 %v685_v54, %s1187_s12  ;;  %v690_v63 = vmul.f32 %v646_v21, %v1564_v50  ;;  %v695_v0 = vmul.f32 %v666_v38, %v1564_v50  ;;  %v694_v1 = vmul.f32 %v662_v24, %v1564_v50  ;;  %v958_v21 = vpop.permute.xlu2 %957 }
 0x311   :  { %716 = vrot.lane.b32.xlu0 %v684_v53, %s1187_s12  ;;  %v693_v6 = vmul.f32 %v658_v26, %v1564_v50  ;;  %v698_v8 = vmul.f32 %v678_v41, %v1564_v50  ;;  %v697_v37 = vmul.f32 %v674_v14, %v1564_v50  ;;  %v696_v9 = vmul.f32 %v670_v29, %v1564_v50  ;;  %v838_v26 = vpop.permute.xlu1 %837 }
 0x312   :  { %v846_v48 = vmul.f32 %v790_v2, %v1564_v50  ;;  %v845_v17 = vmul.f32 %v786_v35, %v1564_v50  ;;  %v699_v51 = vmul.f32 %v682_v32, %v1564_v50  ;;  %v849_v55 = vmul.f32 %v802_v23, %v1564_v50 }
 0x313   :  { %v848_v29 = vmul.f32 %v1555_v40, %v1564_v50  ;;  %v844_v30 = vmul.f32 %v782_v19, %v1564_v50  ;;  %v852_v33 = vmul.f32 %v814_v7, %v1564_v50  ;;  %v851_v35 = vmul.f32 %v810_v27, %v1564_v50 }
 0x314   :  { %v847_v38 = vmul.f32 %v794_v16, %v1564_v50  ;;  %v855_v44 = vmul.f32 %v826_v11, %v1564_v50  ;;  %v850_v52 = vmul.f32 %v1562_v46, %v1564_v50  ;;  %v858_v56 = vmul.f32 %v838_v26, %v1564_v50 }
 0x315   :  { %v853_v58 = vmul.f32 %v1571_v57, %v1564_v50  ;;  %v1008_v24 = vmul.f32 %v958_v21, %v1564_v50 }
 0x317   :  { %v822_v40 = vpop.permute.xlu0 %821 }
 0x318   :  { %726 = vrot.lane.b32.xlu2 %v689_v15, %s1187_s12  ;;  %724 = vrot.lane.b32.xlu1 %v688_v12, %s1187_s12  ;;  %v1615_v32 = vpop.permute.xlu2 %965  ;;  %v854_v19 = vmul.f32 %v822_v40, %v1564_v50 }
 0x319   :  { %722 = vrot.lane.b32.xlu0 %v687_v59, %s1187_s12  ;;  %v942_v41 = vpop.permute.xlu1 %941 }
 0x31f   :  { %v834_v54 = vpop.permute.xlu0 %833 }
 0x320   :  { %732 = vrot.lane.b32.xlu2 %v692_v61, %s1187_s12  ;;  %730 = vrot.lane.b32.xlu1 %v691_v62, %s1187_s12  ;;  %v1623_v43 = vpop.permute.xlu2 %977  ;;  %v857_v15 = vmul.f32 %v834_v54, %v1564_v50  ;;  %v1005_v61 = vmul.f32 %v946_v36, %v1564_v50  ;;  %v856_v62 = vmul.f32 %v1580_v60, %v1564_v50 }
 0x321   :  { %728 = vrot.lane.b32.xlu0 %v690_v63, %s1187_s12  ;;  %v954_v53 = vpop.permute.xlu1 %953  ;;  %v590_v60 = vmul.f32 %v1531_v49, %v1564_v50  ;;  %v593_v36 = vmul.f32 %v1526_v45, %v1564_v50 }
 0x327   :  { %v950_v12 = vpop.permute.xlu0 %949 }
 0x328   :  { %738 = vrot.lane.b32.xlu2 %v695_v0, %s1187_s12  ;;  %736 = vrot.lane.b32.xlu1 %v694_v1, %s1187_s12  ;;  %v1634_v16 = vpop.permute.xlu2 %989  ;;  %v1006_v59 = vmul.f32 %v950_v12, %v1564_v50  ;;  %v859_v1 = vmul.f32 %v1588_v22, %v1564_v50 }
 0x329   :  { %734 = vrot.lane.b32.xlu0 %v693_v6, %s1187_s12  ;;  %v962_v46 = vpop.permute.xlu1 %961 }
 0x32a   :  { %v1009_v63 = vmul.f32 %v962_v46, %v1564_v50 }
 0x32f   :  { %v970_v0 = vpop.permute.xlu0 %969 }
 0x330   :  { %744 = vrot.lane.b32.xlu2 %v698_v8, %s1187_s12  ;;  %742 = vrot.lane.b32.xlu1 %v697_v37, %s1187_s12  ;;  %v1647_v57 = vpop.permute.xlu2 %1001  ;;  %v1011_v8 = vmul.f32 %v970_v0, %v1564_v50  ;;  %v1004_v37 = vmul.f32 %v942_v41, %v1564_v50 }
 0x331   :  { %740 = vrot.lane.b32.xlu0 %v696_v9, %s1187_s12  ;;  %v974_v23 = vpop.permute.xlu1 %973 }
 0x332   :  { %v1012_v14 = vmul.f32 %v974_v23, %v1564_v50  ;;  %v597_v23 = vmul.f32 %v1551_v34, %v1564_v50 }
 0x337   :  { %v982_v49 = vpop.permute.xlu0 %981 }
 0x338   :  { %880 = vrot.lane.b32.xlu2 %v846_v48, %s1188_s13  ;;  %878 = vrot.lane.b32.xlu1 %v845_v17, %s1188_s13  ;;  %v1014_v48 = vmul.f32 %v982_v49, %v1564_v50  ;;  %v1007_v17 = vmul.f32 %v954_v53, %v1564_v50  ;;  %v591_v53 = vmul.f32 %v1535_v3, %v1564_v50 }
 0x339   :  { %746 = vrot.lane.b32.xlu0 %v699_v51, %s1187_s12  ;;  %v986_v22 = vpop.permute.xlu1 %985  ;;  %v596_v51 = vmul.f32 %v1529_v47, %v1564_v50  ;;  %v599_v47 = vmul.f32 %v1533_v4, %v1564_v50  ;;  %v1013_v4 = vmul.f32 %v1623_v43, %v1564_v50  ;;  %v594_v3 = vmul.f32 %v1549_v31, %v1564_v50 }
 0x33a   :  { %v1015_v2 = vmul.f32 %v986_v22, %v1564_v50  ;;  %v603_v22 = vmul.f32 %v1557_v42, %v1564_v50 }
 0x33f   :  { %v994_v26 = vpop.permute.xlu0 %993 }
 0x340   :  { %886 = vrot.lane.b32.xlu2 %v849_v55, %s1188_s13  ;;  %884 = vrot.lane.b32.xlu1 %v848_v29, %s1188_s13  ;;  %v1017_v29 = vmul.f32 %v994_v26, %v1564_v50 }
 0x341   :  { %876 = vrot.lane.b32.xlu0 %v844_v30, %s1188_s13  ;;  %v998_v21 = vpop.permute.xlu1 %997  ;;  %v1010_v30 = vmul.f32 %v1615_v32, %v1564_v50 }
 0x342   :  { %v1018_v27 = vmul.f32 %v998_v21, %v1564_v50 }
 0x348   :  { %892 = vrot.lane.b32.xlu2 %v852_v33, %s1188_s13  ;;  %890 = vrot.lane.b32.xlu1 %v851_v35, %s1188_s13  ;;  %v589_v33 = vmul.f32 %v1547_v28, %v1564_v50  ;;  %v602_v28 = vmul.f32 %v1537_v5, %v1564_v50  ;;  %v1016_v5 = vmul.f32 %v1634_v16, %v1564_v50 }
 0x349   :  { %882 = vrot.lane.b32.xlu0 %v847_v38, %s1188_s13  ;;  %v588_v38 = vmul.f32 %v1545_v25, %v1564_v50  ;;  %v598_v16 = vmul.f32 %v1541_v18, %v1564_v50 }
 0x350   :  { %898 = vrot.lane.b32.xlu2 %v855_v44, %s1188_s13  ;;  %896 = vrot.lane.b32.xlu1 %v854_v19, %s1188_s13 }
 0x351   :  { %888 = vrot.lane.b32.xlu0 %v850_v52, %s1188_s13  ;;  %v592_v52 = vmul.f32 %v1523_v10, %v1564_v50  ;;  %v595_v10 = vmul.f32 %v1539_v13, %v1564_v50 }
 0x358   :  { %904 = vrot.lane.b32.xlu2 %v858_v56, %s1188_s13  ;;  %902 = vrot.lane.b32.xlu1 %v857_v15, %s1188_s13 }
 0x359   :  { %894 = vrot.lane.b32.xlu0 %v853_v58, %s1188_s13 }
 0x360   :  { %1040 = vrot.lane.b32.xlu2 %v1006_v59, %s1189_s29  ;;  %1038 = vrot.lane.b32.xlu1 %v1005_v61, %s1189_s29 }
 0x361   :  { %900 = vrot.lane.b32.xlu0 %v856_v62, %s1188_s13 }
 0x368   :  { %1046 = vrot.lane.b32.xlu2 %v1009_v63, %s1189_s29  ;;  %1044 = vrot.lane.b32.xlu1 %v1008_v24, %s1189_s29  ;;  %v1019_v63 = vmul.f32 %v1647_v57, %v1564_v50  ;;  %v600_v57 = vmul.f32 %v1553_v39, %v1564_v50 }
 0x369   :  { %906 = vrot.lane.b32.xlu0 %v859_v1, %s1188_s13 }
 0x36a   :  { %v721_v6 = vpop.permute.xlu2 %720 }
 0x36b   :  { %v1659_v7 = vadd.f32 %v721_v6, %v590_v60  ;;  %v601_v60 = vmul.f32 %v1543_v20, %v1564_v50 }
 0x370   :  { %1052 = vrot.lane.b32.xlu2 %v1012_v14, %s1189_s29  ;;  %1050 = vrot.lane.b32.xlu1 %v1011_v8, %s1189_s29 }
 0x371   :  { %1036 = vrot.lane.b32.xlu0 %v1004_v37, %s1189_s29 }
 0x372   :  { %v727_v9 = vpop.permute.xlu2 %726 }
 0x373   :  { %v1669_v11 = vadd.f32 %v727_v9, %v593_v36 }
 0x378   :  { %1058 = vrot.lane.b32.xlu2 %v1015_v2, %s1189_s29  ;;  %1056 = vrot.lane.b32.xlu1 %v1014_v48, %s1189_s29 }
 0x379   :  { %1042 = vrot.lane.b32.xlu0 %v1007_v17, %s1189_s29 }
 0x37a   :  { %v733_v45 = vpop.permute.xlu2 %732 }
 0x37b   :  { %v1679_v55 = vadd.f32 %v733_v45, %v596_v51 }
 0x380   :  { %1064 = vrot.lane.b32.xlu2 %v1018_v27, %s1189_s29  ;;  %1062 = vrot.lane.b32.xlu1 %v1017_v29, %s1189_s29 }
 0x381   :  { %1048 = vrot.lane.b32.xlu0 %v1010_v30, %s1189_s29 }
 0x382   :  { %v739_v35 = vpop.permute.xlu2 %738  ;;  %v719_v40 = vpop.permute.xlu1 %718 }
 0x383   :  { %v1694_v41 = vadd.f32 %v739_v35, %v599_v47  ;;  %v1696_v32 = vadd.f32 %v719_v40, %v589_v33  ;;  %v717_v44 = vpop.permute.xlu0 %716 }
 0x384   :  { %v1698_v19 = vadd.f32 %v717_v44, %v588_v38 }
 0x389   :  { %1054 = vrot.lane.b32.xlu0 %v1013_v4, %s1189_s29 }
 0x38a   :  { %v745_v25 = vpop.permute.xlu2 %744  ;;  %v725_v56 = vpop.permute.xlu1 %724 }
 0x38b   :  { %v1709_v54 = vadd.f32 %v745_v25, %v602_v28  ;;  %v1711_v15 = vadd.f32 %v725_v56, %v592_v52  ;;  %v723_v58 = vpop.permute.xlu0 %722 }
 0x38c   :  { %v1713_v46 = vadd.f32 %v723_v58, %v591_v53 }
 0x391   :  { %1060 = vrot.lane.b32.xlu0 %v1016_v5, %s1189_s29 }
 0x392   :  { %v881_v43 = vpop.permute.xlu2 %880  ;;  %v731_v12 = vpop.permute.xlu1 %730 }
 0x393   :  { %v1722_v59 = vadd.f32 %v731_v12, %v595_v10  ;;  %v729_v61 = vpop.permute.xlu0 %728  ;;  %v926_v17 = vadd.f32 %v881_v43, %v1659_v7 }
 0x394   :  { %v1724_v62 = vadd.f32 %v729_v61, %v594_v3 }
 0x399   :  { %1066 = vrot.lane.b32.xlu0 %v1019_v63, %s1189_s29 }
 0x39a   :  { %v887_v13 = vpop.permute.xlu2 %886  ;;  %v737_v24 = vpop.permute.xlu1 %736 }
 0x39b   :  { %v1733_v31 = vadd.f32 %v737_v24, %v598_v16  ;;  %v735_v0 = vpop.permute.xlu0 %734  ;;  %v929_v42 = vadd.f32 %v887_v13, %v1669_v11 }
 0x39c   :  { %v1735_v1 = vadd.f32 %v735_v0, %v597_v23 }
 0x3a2   :  { %v893_v6 = vpop.permute.xlu2 %892  ;;  %v743_v18 = vpop.permute.xlu1 %742 }
 0x3a3   :  { %v1741_v14 = vadd.f32 %v743_v18, %v601_v60  ;;  %v741_v8 = vpop.permute.xlu0 %740  ;;  %v932_v7 = vadd.f32 %v893_v6, %v1679_v55 }
 0x3a4   :  { %v1743_v37 = vadd.f32 %v741_v8, %v600_v57 }
 0x3aa   :  { %v899_v34 = vpop.permute.xlu2 %898  ;;  %v879_v36 = vpop.permute.xlu1 %878 }
 0x3ab   :  { %v747_v49 = vpop.permute.xlu0 %746  ;;  %v935_v11 = vadd.f32 %v899_v34, %v1694_v41  ;;  %v925_v38 = vadd.f32 %v879_v36, %v1696_v32 }
 0x3ac   :  { %v1747_v9 = vadd.f32 %v747_v49, %v603_v22 }
 0x3b2   :  { %v905_v2 = vpop.permute.xlu2 %904  ;;  %v885_v20 = vpop.permute.xlu1 %884 }
 0x3b3   :  { %v877_v48 = vpop.permute.xlu0 %876  ;;  %v938_v55 = vadd.f32 %v905_v2, %v1709_v54  ;;  %v928_v41 = vadd.f32 %v885_v20, %v1711_v15 }
 0x3b4   :  { %v924_v54 = vadd.f32 %v877_v48, %v1698_v19 }
 0x3ba   :  { %v1041_v39 = vpop.permute.xlu2 %1040  ;;  %v891_v45 = vpop.permute.xlu1 %890 }
 0x3bb   :  { %v1086_v51 = vadd.f32 %v1041_v39, %v926_v17  ;;  %v883_v21 = vpop.permute.xlu0 %882  ;;  %v931_v5 = vadd.f32 %v891_v45, %v1722_v59 }
 0x3bc   :  { %v927_v59 = vadd.f32 %v883_v21, %v1713_v46 }
 0x3bd   :  { %1103 = vst.msk [vmem:[%s1843_s14 + $0x4] sm:$0x3] %vm1100_vm13, %v1086_v51 }
 0x3c2   :  { %v1047_v50 = vpop.permute.xlu2 %1046  ;;  %v897_v27 = vpop.permute.xlu1 %896 }
 0x3c3   :  { %v1089_v26 = vadd.f32 %v1047_v50, %v929_v42  ;;  %v889_v29 = vpop.permute.xlu0 %888  ;;  %v934_v12 = vadd.f32 %v897_v27, %v1733_v31 }
 0x3c4   :  { %v930_v23 = vadd.f32 %v889_v29, %v1724_v62 }
 0x3c5   :  { %1106 = vst.msk [vmem:[%s1843_s14 + $0xa] sm:$0x3] %vm1100_vm13, %v1089_v26 }
 0x3ca   :  { %v1053_v30 = vpop.permute.xlu2 %1052  ;;  %v903_v33 = vpop.permute.xlu1 %902 }
 0x3cb   :  { %v1092_v47 = vadd.f32 %v1053_v30, %v932_v7  ;;  %v895_v35 = vpop.permute.xlu0 %894  ;;  %v937_v13 = vadd.f32 %v903_v33, %v1741_v14 }
 0x3cc   :  { %v933_v60 = vadd.f32 %v895_v35, %v1735_v1 }
 0x3cd   :  { %1109 = vst.msk [vmem:[%s1843_s14 + $0x10] sm:$0x3] %vm1100_vm13, %v1092_v47 }
 0x3d2   :  { %v1059_v40 = vpop.permute.xlu2 %1058  ;;  %v1039_v4 = vpop.permute.xlu1 %1038 }
 0x3d3   :  { %v1095_v44 = vadd.f32 %v1059_v40, %v935_v11  ;;  %v1085_v28 = vadd.f32 %v1039_v4, %v925_v38  ;;  %v901_v52 = vpop.permute.xlu0 %900 }
 0x3d4   :  { %v936_v62 = vadd.f32 %v901_v52, %v1743_v37 }
 0x3d5   :  { %1112 = vst.msk [vmem:[%s1843_s14 + $0x16] sm:$0x3] %vm1100_vm13, %v1095_v44 }
 0x3d6   :  { %1102 = vst.msk [vmem:[%s1843_s14 + $0x2] sm:$0x3] %vm1100_vm13, %v1085_v28 }
 0x3da   :  { %v1065_v32 = vpop.permute.xlu2 %1064  ;;  %v1045_v53 = vpop.permute.xlu1 %1044 }
 0x3db   :  { %v1098_v25 = vadd.f32 %v1065_v32, %v938_v55  ;;  %v1088_v56 = vadd.f32 %v1045_v53, %v928_v41  ;;  %v907_v58 = vpop.permute.xlu0 %906 }
 0x3dc   :  { %v939_v8 = vadd.f32 %v907_v58, %v1747_v9 }
 0x3dd   :  { %1115 = vst.msk [vmem:[%s1843_s14 + $0x1c] sm:$0x3] %vm1100_vm13, %v1098_v25 }
 0x3de   :  { %1105 = vst.msk [vmem:[%s1843_s14 + $0x8] sm:$0x3] %vm1100_vm13, %v1088_v56 }
 0x3e2   :  { %v1051_v15 = vpop.permute.xlu1 %1050 }
 0x3e3   :  { %v1091_v10 = vadd.f32 %v1051_v15, %v931_v5  ;;  %v1037_v43 = vpop.permute.xlu0 %1036 }
 0x3e4   :  { %v1084_v3 = vadd.f32 %v1037_v43, %v924_v54 }
 0x3e5   :  { %1108 = vst.msk [vmem:[%s1843_s14 + $0xe] sm:$0x3] %vm1100_vm13, %v1091_v10 }
 0x3e6   :  { %1101 = vst.msk [vmem:[%s1843_s14] sm:$0x3] %vm1100_vm13, %v1084_v3 }
 0x3ea   :  { %v1057_v61 = vpop.permute.xlu1 %1056 }
 0x3eb   :  { %v1094_v19 = vadd.f32 %v1057_v61, %v934_v12  ;;  %v1043_v63 = vpop.permute.xlu0 %1042 }
 0x3ec   :  { %v1087_v16 = vadd.f32 %v1043_v63, %v927_v59 }
 0x3ed   :  { %1111 = vst.msk [vmem:[%s1843_s14 + $0x14] sm:$0x3] %vm1100_vm13, %v1094_v19 }
 0x3ee   :  { %1104 = vst.msk [vmem:[%s1843_s14 + $0x6] sm:$0x3] %vm1100_vm13, %v1087_v16 }
 0x3f2   :  { %v1063_v24 = vpop.permute.xlu1 %1062 }
 0x3f3   :  { %v1097_v46 = vadd.f32 %v1063_v24, %v937_v13  ;;  %v1049_v31 = vpop.permute.xlu0 %1048 }
 0x3f4   :  { %v1090_v0 = vadd.f32 %v1049_v31, %v930_v23 }
 0x3f5   :  { %1114 = vst.msk [vmem:[%s1843_s14 + $0x1a] sm:$0x3] %vm1100_vm13, %v1097_v46 }
 0x3f6   :  { %1107 = vst.msk [vmem:[%s1843_s14 + $0xc] sm:$0x3] %vm1100_vm13, %v1090_v0 }
 0x3fb   :  { %v1055_v6 = vpop.permute.xlu0 %1054 }
 0x3fc   :  { %v1093_v57 = vadd.f32 %v1055_v6, %v933_v60 }
 0x3fe   :  { %1110 = vst.msk [vmem:[%s1843_s14 + $0x12] sm:$0x3] %vm1100_vm13, %v1093_v57 }
 0x403   :  { %v1061_v18 = vpop.permute.xlu0 %1060 }
 0x404   :  { %v1096_v14 = vadd.f32 %v1061_v18, %v936_v62 }
 0x406   :  { %1113 = vst.msk [vmem:[%s1843_s14 + $0x18] sm:$0x3] %vm1100_vm13, %v1096_v14 }
 0x40b   :  { %v1067_v34 = vpop.permute.xlu0 %1066 }
 0x40c   :  { %v1099_v1 = vadd.f32 %v1067_v34, %v939_v8 }
 0x40e   :  { %1116 = vst.msk [vmem:[%s1843_s14 + $0x1e] sm:$0x3] %vm1100_vm13, %v1099_v1 }

</bundles_post_ra>
